<compile_context>
chip_gen: v5e
topology: v5e:2x2
jax: 0.10.0
libtpu: 0.0.40
codegen_flags: <defaults>
</compile_context>

<pallas_src>
import functools
import math

import jax
import jax.numpy as jnp
from jax.experimental import pallas as pl
from jax.experimental.pallas import tpu as pltpu

BN_EPS = 1e-5
LRELU_SLOPE = 0.01            # nn.LeakyReLU() default negative_slope
COMPUTE_DTYPE = jnp.bfloat16  # MXU operand dtype (accumulation / BN stats in f32)
CONV_TILE_M = 2048            # flattened-voxel columns per grid step (conv)
POOL_TILE_M = 8192            # flattened-voxel columns per grid step (maxpool)


# -----------------------------------------------------------------------------
# Helpers
# -----------------------------------------------------------------------------
def _choose_tile(m, cap):
    """Pick a lane-dense tile along the flattened voxel axis.

    Returns (tile, padded_m). Prefers tiles that divide m exactly; otherwise
    pads m up to a multiple of `cap` (padded columns are zero and inert).
    """
    if m <= cap:
        return m, m                                   # single full-extent block
    for t in (8192, 4096, 2048, 1024, 512, 256, 128):
        if t <= cap and m % t == 0:
            return t, m
    return cap, ((m + cap - 1) // cap) * cap


def _vmem_limit(block_bytes):
    # Inputs/outputs are double-buffered by the pipeline; leave headroom but
    # stay well under v7x's 64 MiB per-core VMEM.
    return int(min(64 * 2**20, max(16 * 2**20, 4 * block_bytes)))


# -----------------------------------------------------------------------------
# Pallas kernels
# -----------------------------------------------------------------------------
def _conv_stats_kernel(w_ref, p_ref, y_ref, sum_ref, ssq_ref):
    """Tiled conv matmul + global per-channel sum / sum-of-squares.

    w_ref:   (Cout, Kc)  bf16  weights (constant index map -> resident)
    p_ref:   (Kc, TM)    bf16  patch-stream tile (voxels on lanes)
    y_ref:   (Cout, TM)  f32   pre-BN conv output tile (lane-dense stores)
    sum_ref: (Cout, 1)   f32   resident accumulator (same block every step)
    ssq_ref: (Cout, 1)   f32   resident accumulator
    """
    y = jnp.dot(w_ref[...], p_ref[...], preferred_element_type=jnp.float32)
    y_ref[...] = y

    @pl.when(pl.program_id(0) == 0)
    def _():
        sum_ref[...] = jnp.zeros_like(sum_ref)
        ssq_ref[...] = jnp.zeros_like(ssq_ref)

    sum_ref[...] += jnp.sum(y, axis=1, keepdims=True)      # XLU cross-lane reduce
    ssq_ref[...] += jnp.sum(y * y, axis=1, keepdims=True)


def _bn_lrelu_kernel(inv_count, y_ref, sum_ref, ssq_ref, gamma_ref, beta_ref, o_ref):
    """Training-mode BatchNorm3d (global batch stats, biased var) + LeakyReLU.

    Per-channel scale/shift is folded once per tile on a (Cout, 1) vector
    (EUP rsqrt), so the per-element work is one fma + one select.
    """
    mean = sum_ref[...] * inv_count
    var = jnp.maximum(ssq_ref[...] * inv_count - mean * mean, 0.0)
    scale = gamma_ref[...] * jax.lax.rsqrt(var + BN_EPS)
    shift = beta_ref[...] - mean * scale
    z = y_ref[...] * scale + shift
    o_ref[...] = jnp.where(z >= 0, z, LRELU_SLOPE * z).astype(o_ref.dtype)


def _max3_kernel(a_ref, b_ref, c_ref, o_ref):
    """Elementwise max of three equal-shape tiles (one separable maxpool tap pass)."""
    o_ref[...] = jnp.maximum(jnp.maximum(a_ref[...], b_ref[...]), c_ref[...])


# -----------------------------------------------------------------------------
# Conv + BN + LeakyReLU block
# -----------------------------------------------------------------------------
def _im2col_T(x, ksize, pads):
    """Transposed im2col: x (C, N, D, H, W) -> patches^T (K*C, N*D*H*W), bf16.

    1x1x1 kernels skip extraction entirely (patches^T == reshaped x, zero copy).
    # TODO(synk): for large volumes, stream taps from a padded HBM copy with
    # manual make_async_copy inside the matmul kernel instead of materializing
    # the K-times expanded patch matrix in HBM here.
    """
    C, N, D, H, W = x.shape
    kd, kh, kw = ksize
    x = x.astype(COMPUTE_DTYPE)
    m = N * D * H * W
    if (kd, kh, kw) == (1, 1, 1):
        return x.reshape(C, m)
    pd, ph, pw = pads
    xp = jnp.pad(x, ((0, 0), (0, 0), (pd, pd), (ph, ph), (pw, pw)))
    taps = []
    for a in range(kd):
        for b in range(kh):
            for c in range(kw):
                taps.append(xp[:, :, a:a + D, b:b + H, c:c + W])
    return jnp.stack(taps, axis=0).reshape(kd * kh * kw * C, m)


def conv_bn_lrelu(x, w, gamma, beta, ksize, pads, out_dtype=jnp.float32):
    """Conv3d (stride 1) + training-mode BatchNorm3d + LeakyReLU.

    x: (Cin, N, D, H, W) -> (Cout, N, D, H, W) in `out_dtype`.
    The Conv3d bias is exactly cancelled by the BN mean subtraction, so it is
    dropped from the compute (numerically identical up to fp rounding).
    """
    _cin, N, D, H, W = x.shape
    cout = w.shape[0]
    m = N * D * H * W

    pT = _im2col_T(x, ksize, pads)                             # (Kc, M) bf16
    kc = pT.shape[0]
    w_mat = jnp.transpose(w, (0, 2, 3, 4, 1)).reshape(cout, kc).astype(COMPUTE_DTYPE)

    tm, mp = _choose_tile(m, CONV_TILE_M)
    if mp != m:
        pT = jnp.pad(pT, ((0, 0), (0, mp - m)))                # zero cols: inert
    grid = (mp // tm,)

    # ---- pass 1: tiled bf16 MXU matmul + resident sum / sum-of-squares --------
    blk_bytes = cout * kc * 2 + kc * tm * 2 + cout * tm * 4 + 2 * cout * 4
    yT, ssum, ssq = pl.pallas_call(
        _conv_stats_kernel,
        out_shape=(
            jax.ShapeDtypeStruct((cout, mp), jnp.float32),
            jax.ShapeDtypeStruct((cout, 1), jnp.float32),
            jax.ShapeDtypeStruct((cout, 1), jnp.float32),
        ),
        grid=grid,
        in_specs=[
            pl.BlockSpec((cout, kc), lambda i: (0, 0)),        # weights: resident
            pl.BlockSpec((kc, tm), lambda i: (0, i)),          # patch stream
        ],
        out_specs=(
            pl.BlockSpec((cout, tm), lambda i: (0, i)),        # lane-dense output
            pl.BlockSpec((cout, 1), lambda i: (0, 0)),         # resident accumulators
            pl.BlockSpec((cout, 1), lambda i: (0, 0)),
        ),
        compiler_params=pltpu.CompilerParams(
            dimension_semantics=("arbitrary",),                # stats reduce over M
            vmem_limit_bytes=_vmem_limit(blk_bytes)),
    )(w_mat, pT)

    # ---- pass 2: normalize + LeakyReLU (elementwise, parallel over M) ---------
    g = gamma.reshape(cout, 1).astype(jnp.float32)
    bshift = beta.reshape(cout, 1).astype(jnp.float32)
    small_spec = pl.BlockSpec((cout, 1), lambda i: (0, 0))
    blk_bytes2 = cout * tm * 4 + cout * tm * jnp.dtype(out_dtype).itemsize + 4 * cout * 4
    oT = pl.pallas_call(
        functools.partial(_bn_lrelu_kernel, 1.0 / m),
        out_shape=jax.ShapeDtypeStruct((cout, mp), out_dtype),
        grid=grid,
        in_specs=[
            pl.BlockSpec((cout, tm), lambda i: (0, i)),
            small_spec, small_spec, small_spec, small_spec,
        ],
        out_specs=pl.BlockSpec((cout, tm), lambda i: (0, i)),
        compiler_params=pltpu.CompilerParams(
            dimension_semantics=("parallel",),
            vmem_limit_bytes=_vmem_limit(blk_bytes2)),
    )(yT, ssum, ssq, g, bshift)

    if mp != m:
        oT = oT[:, :m]
    return oT.reshape(cout, N, D, H, W)


# -----------------------------------------------------------------------------
# Separable MaxPool3d(kernel=3, stride=1, padding=1)
# -----------------------------------------------------------------------------
def _ew_max3(a, b, c):
    """Elementwise max of three (C,N,D,H,W) arrays, tiled lane-dense in Pallas."""
    shape = a.shape
    rows = shape[0] * shape[1]
    cols = math.prod(shape[2:])
    a2, b2, c2 = (t.reshape(rows, cols) for t in (a, b, c))
    tl, colsp = _choose_tile(cols, POOL_TILE_M)
    if colsp != cols:
        padw = ((0, 0), (0, colsp - cols))
        a2, b2, c2 = (jnp.pad(t, padw) for t in (a2, b2, c2))
    spec = pl.BlockSpec((rows, tl), lambda i: (0, i))
    blk_bytes = 4 * rows * tl * a.dtype.itemsize
    out = pl.pallas_call(
        _max3_kernel,
        out_shape=jax.ShapeDtypeStruct((rows, colsp), a.dtype),
        grid=(colsp // tl,),
        in_specs=[spec, spec, spec],
        out_specs=spec,
        compiler_params=pltpu.CompilerParams(
            dimension_semantics=("parallel",),
            vmem_limit_bytes=_vmem_limit(blk_bytes)),
    )(a2, b2, c2)
    if colsp != cols:
        out = out[:, :cols]
    return out.reshape(shape)


def _pool_axis(x, axis):
    """1-D max over a 3-wide window, stride 1, implicit -inf padding of 1."""
    size = x.shape[axis]
    padw = [(0, 0)] * x.ndim
    padw[axis] = (1, 1)
    xp = jnp.pad(x, padw, constant_values=-jnp.inf)
    s0 = jax.lax.slice_in_dim(xp, 0, size, axis=axis)
    s1 = jax.lax.slice_in_dim(xp, 1, size + 1, axis=axis)
    s2 = jax.lax.slice_in_dim(xp, 2, size + 2, axis=axis)
    return _ew_max3(s0, s1, s2)


def maxpool3d_3x3x3_s1_p1(x):
    """MaxPool3d(3, stride=1, padding=1) on (C, N, D, H, W), separable W->H->D."""
    y = _pool_axis(x, 4)
    y = _pool_axis(y, 3)
    return _pool_axis(y, 2)


# -----------------------------------------------------------------------------
# Fconv (n=1): spec construction, parameters, forward
# -----------------------------------------------------------------------------
def _fconv_specs(in_channel, out_channel_list, middle_channel_list):
    m, o = middle_channel_list, out_channel_list
    assert m[2] == m[3], "forward() chains branch2_3 -> branch2_4; needs m[2] == m[3]"
    return {
        "branch1_1": (in_channel, m[0], (1, 1, 1), (0, 0, 0)),
        "branch1_2": (m[0], o[0], (3, 3, 3), (1, 1, 1)),
        "branch2_1": (in_channel, m[1], (1, 1, 1), (0, 0, 0)),
        "branch2_2": (m[1], m[2], (1, 3, 3), (0, 1, 1)),
        "branch2_3": (m[2], m[3], (3, 1, 3), (1, 0, 1)),
        "branch2_4": (m[2], m[3], (3, 3, 1), (1, 1, 0)),
        "branch2_5": (m[3], o[1], (3, 3, 3), (1, 1, 1)),
    }


def build_fconv_forward(in_channel, out_channel_list, middle_channel_list):
    """Returns (jitted forward(x_ncdhw, params), specs).

    Kernel sizes / paddings are static Python data captured by closure so they
    are never traced (fixes the previous ConcretizationTypeError)."""
    specs = _fconv_specs(in_channel, out_channel_list, middle_channel_list)

    @jax.jit
    def forward(x_ncdhw, params):
        # NCDHW (PyTorch) in/out; (C, N, D, H, W) internally.
        x = jnp.transpose(x_ncdhw, (1, 0, 2, 3, 4))

        def run(name, inp, out_dtype):
            w, _bias, gamma, beta = params[name]         # bias cancelled by BN
            _cin, _cout, ksize, pads = specs[name]
            return conv_bn_lrelu(inp, w, gamma, beta, ksize, pads, out_dtype)

        bf = COMPUTE_DTYPE  # intermediate activations bf16; branch outputs f32
        out1 = run("branch1_2", run("branch1_1", x, bf), jnp.float32)
        h = run("branch2_1", x, bf)
        h = run("branch2_2", h, bf)
        h = run("branch2_3", h, bf)
        h = run("branch2_4", h, bf)
        out2 = run("branch2_5", h, jnp.float32)
        out3 = maxpool3d_3x3x3_s1_p1(x)
        cat = jnp.concatenate([out1, out2, out3], axis=0)   # channel concat
        return jnp.transpose(cat, (1, 0, 2, 3, 4))          # back to NCDHW

    return forward, specs


def init_fconv_params(key, specs):
    """Deterministic parameters mirroring Fconv.__init__ with n=1."""
    params = {}
    for k, (name, (cin, cout, ksize, _pads)) in zip(
            jax.random.split(key, len(specs)), specs.items()):
        kw_key, kb_key = jax.random.split(k)
        kd, kh, kw = ksize
        w = 0.1 * jax.random.normal(kw_key, (cout, cin, kd, kh, kw), jnp.float32)
        b = 0.05 * jax.random.normal(kb_key, (cout,), jnp.float32)  # unused (BN cancels)
        gamma = 1.0 + 0.01 * jnp.arange(cout, dtype=jnp.float32)
        beta = 0.01 * jnp.arange(cout, dtype=jnp.float32)
        params[name] = (w, b, gamma, beta)
    return params


if __name__ == "__main__":
    key = jax.random.PRNGKey(0)
    k_x, k_p = jax.random.split(key)

    # Small shapes: N=2, C_in=4, D=H=W=8
    N, Cin, D, H, W = 2, 4, 8, 8, 8
    out_channel_list = [8, 8]
    middle_channel_list = [4, 4, 4, 4]   # list[2] == list[3] required by forward()

    forward, specs = build_fconv_forward(Cin, out_channel_list, middle_channel_list)
    params = init_fconv_params(k_p, specs)
    x = jax.random.normal(k_x, (N, Cin, D, H, W), jnp.float32)

    y = forward(x, params)
    jax.block_until_ready(y)

    expected_c = out_channel_list[0] + out_channel_list[1] + Cin
    assert y.shape == (N, expected_c, D, H, W), y.shape
    assert bool(jnp.all(jnp.isfinite(y)))
    print("KERNEL_OK")
</pallas_src>

<mosaic_0001>
module attributes {stable_mosaic.version = 11 : i64} {
  func.func @_conv_stats_kernel(%arg0: i32, %arg1: memref<4x4xbf16, #tpu.memory_space<vmem>>, %arg2: memref<4x1024xbf16, #tpu.memory_space<vmem>>, %arg3: memref<4x1024xf32, #tpu.memory_space<vmem>>, %arg4: memref<4x1xf32, #tpu.memory_space<vmem>>, %arg5: memref<4x1xf32, #tpu.memory_space<vmem>>) attributes {dimension_semantics = [#tpu.dimension_semantics<arbitrary>], iteration_bounds = array<i64: 1>, scalar_prefetch = 0 : i64, scratch_operands = 0 : i64, tpu.core_type = #tpu.core_type<tc>, window_params = [{pipeline_mode = #tpu.pipeline_mode<synchronous>, transform_indices = @transform_0, window_bounds = array<i64: 4, 4>}, {transform_indices = @transform_1, window_bounds = array<i64: 4, 1024>}, {transform_indices = @transform_2, window_bounds = array<i64: 4, 1024>}, {pipeline_mode = #tpu.pipeline_mode<synchronous>, transform_indices = @transform_3, window_bounds = array<i64: 4, 1>}, {pipeline_mode = #tpu.pipeline_mode<synchronous>, transform_indices = @transform_4, window_bounds = array<i64: 4, 1>}]} {
    %c0 = arith.constant 0 : index
    %c0_0 = arith.constant 0 : index
    %0 = vector.load %arg1[%c0, %c0_0] : memref<4x4xbf16, #tpu.memory_space<vmem>>, vector<4x4xbf16>
    %c0_1 = arith.constant 0 : index
    %c0_2 = arith.constant 0 : index
    %1 = vector.load %arg2[%c0_1, %c0_2] : memref<4x1024xbf16, #tpu.memory_space<vmem>>, vector<4x1024xbf16>
    %cst = arith.constant dense<0.000000e+00> : vector<4x1024xf32>
    %2 = tpu.matmul %0, %1, %cst {dimension_numbers = #tpu.dot_dimension_numbers<[1], [0], [0], [1], [0, 0, 1, 1], [], []>} : vector<4x4xbf16>, vector<4x1024xbf16>, vector<4x1024xf32> -> vector<4x1024xf32>
    %c0_3 = arith.constant 0 : index
    %c0_4 = arith.constant 0 : index
    %3 = vector.load %arg3[%c0_3, %c0_4] : memref<4x1024xf32, #tpu.memory_space<vmem>>, vector<4x1024xf32>
    tpu.vector_store %arg3[%c0_3, %c0_4], %2 {strides = array<i32>} : memref<4x1024xf32, #tpu.memory_space<vmem>>, vector<4x1024xf32>,
    %c0_i32 = arith.constant 0 : i32
    %4 = arith.cmpi eq, %arg0, %c0_i32 : i32
    %5 = arith.extui %4 : i1 to i32
    %c0_i32_5 = arith.constant 0 : i32
    %6 = arith.cmpi ne, %5, %c0_i32_5 : i32
    scf.if %6 {
      %cst_16 = arith.constant 0.000000e+00 : f32
      %18 = vector.broadcast %cst_16 : f32 to vector<4x1xf32>
      %c0_17 = arith.constant 0 : index
      %c0_18 = arith.constant 0 : index
      %19 = vector.load %arg4[%c0_17, %c0_18] : memref<4x1xf32, #tpu.memory_space<vmem>>, vector<4x1xf32>
      tpu.vector_store %arg4[%c0_17, %c0_18], %18 {strides = array<i32>} : memref<4x1xf32, #tpu.memory_space<vmem>>, vector<4x1xf32>,
      %cst_19 = arith.constant 0.000000e+00 : f32
      %20 = vector.broadcast %cst_19 : f32 to vector<4x1xf32>
      %c0_20 = arith.constant 0 : index
      %c0_21 = arith.constant 0 : index
      %21 = vector.load %arg5[%c0_20, %c0_21] : memref<4x1xf32, #tpu.memory_space<vmem>>, vector<4x1xf32>
      tpu.vector_store %arg5[%c0_20, %c0_21], %20 {strides = array<i32>} : memref<4x1xf32, #tpu.memory_space<vmem>>, vector<4x1xf32>,
    } else {
    }
    %c0_6 = arith.constant 0 : index
    %c0_7 = arith.constant 0 : index
    %7 = vector.load %arg4[%c0_6, %c0_7] : memref<4x1xf32, #tpu.memory_space<vmem>>, vector<4x1xf32>
    %cst_8 = arith.constant dense<0.000000e+00> : vector<4xf32>
    %8 = vector.multi_reduction <add>, %2, %cst_8 [1] : vector<4x1024xf32> to vector<4xf32>
    %9 = vector.shape_cast %8 : vector<4xf32> to vector<4x1xf32>
    %10 = arith.addf %7, %9 : vector<4x1xf32>
    %c0_9 = arith.constant 0 : index
    %c0_10 = arith.constant 0 : index
    %11 = vector.load %arg4[%c0_9, %c0_10] : memref<4x1xf32, #tpu.memory_space<vmem>>, vector<4x1xf32>
    tpu.vector_store %arg4[%c0_9, %c0_10], %10 {strides = array<i32>} : memref<4x1xf32, #tpu.memory_space<vmem>>, vector<4x1xf32>,
    %c0_11 = arith.constant 0 : index
    %c0_12 = arith.constant 0 : index
    %12 = vector.load %arg5[%c0_11, %c0_12] : memref<4x1xf32, #tpu.memory_space<vmem>>, vector<4x1xf32>
    %13 = arith.mulf %2, %2 : vector<4x1024xf32>
    %cst_13 = arith.constant dense<0.000000e+00> : vector<4xf32>
    %14 = vector.multi_reduction <add>, %13, %cst_13 [1] : vector<4x1024xf32> to vector<4xf32>
    %15 = vector.shape_cast %14 : vector<4xf32> to vector<4x1xf32>
    %16 = arith.addf %12, %15 : vector<4x1xf32>
    %c0_14 = arith.constant 0 : index
    %c0_15 = arith.constant 0 : index
    %17 = vector.load %arg5[%c0_14, %c0_15] : memref<4x1xf32, #tpu.memory_space<vmem>>, vector<4x1xf32>
    tpu.vector_store %arg5[%c0_14, %c0_15], %16 {strides = array<i32>} : memref<4x1xf32, #tpu.memory_space<vmem>>, vector<4x1xf32>,
    return
  }
  func.func @transform_0(%arg0: i32) -> (i32, i32) {
    %c0_i32 = arith.constant 0 : i32
    %c0_i32_0 = arith.constant 0 : i32
    %c0_i32_1 = arith.constant 0 : i32
    return %c0_i32, %c0_i32_0 : i32, i32
  }
  func.func @transform_1(%arg0: i32) -> (i32, i32) {
    %c0_i32 = arith.constant 0 : i32
    %c0_i32_0 = arith.constant 0 : i32
    return %c0_i32, %arg0 : i32, i32
  }
  func.func @transform_2(%arg0: i32) -> (i32, i32) {
    %c0_i32 = arith.constant 0 : i32
    %c0_i32_0 = arith.constant 0 : i32
    return %c0_i32, %arg0 : i32, i32
  }
  func.func @transform_3(%arg0: i32) -> (i32, i32) {
    %c0_i32 = arith.constant 0 : i32
    %c0_i32_0 = arith.constant 0 : i32
    %c0_i32_1 = arith.constant 0 : i32
    return %c0_i32, %c0_i32_0 : i32, i32
  }
  func.func @transform_4(%arg0: i32) -> (i32, i32) {
    %c0_i32 = arith.constant 0 : i32
    %c0_i32_0 = arith.constant 0 : i32
    %c0_i32_1 = arith.constant 0 : i32
    return %c0_i32, %c0_i32_0 : i32, i32
  }
}

module attributes {stable_mosaic.version = 11 : i64} {
  func.func @_bn_lrelu_kernel(%arg0: i32, %arg1: memref<4x1024xf32, #tpu.memory_space<vmem>>, %arg2: memref<4x1xf32, #tpu.memory_space<vmem>>, %arg3: memref<4x1xf32, #tpu.memory_space<vmem>>, %arg4: memref<4x1xf32, #tpu.memory_space<vmem>>, %arg5: memref<4x1xf32, #tpu.memory_space<vmem>>, %arg6: memref<4x1024xbf16, #tpu.memory_space<vmem>>) attributes {dimension_semantics = [#tpu.dimension_semantics<parallel>], iteration_bounds = array<i64: 1>, scalar_prefetch = 0 : i64, scratch_operands = 0 : i64, tpu.core_type = #tpu.core_type<tc>, window_params = [{transform_indices = @transform_0, window_bounds = array<i64: 4, 1024>}, {pipeline_mode = #tpu.pipeline_mode<synchronous>, transform_indices = @transform_1, window_bounds = array<i64: 4, 1>}, {pipeline_mode = #tpu.pipeline_mode<synchronous>, transform_indices = @transform_2, window_bounds = array<i64: 4, 1>}, {pipeline_mode = #tpu.pipeline_mode<synchronous>, transform_indices = @transform_3, window_bounds = array<i64: 4, 1>}, {pipeline_mode = #tpu.pipeline_mode<synchronous>, transform_indices = @transform_4, window_bounds = array<i64: 4, 1>}, {transform_indices = @transform_5, window_bounds = array<i64: 4, 1024>}]} {
    %c0 = arith.constant 0 : index
    %c0_0 = arith.constant 0 : index
    %0 = vector.load %arg2[%c0, %c0_0] : memref<4x1xf32, #tpu.memory_space<vmem>>, vector<4x1xf32>
    %cst = arith.constant 9.765625E-4 : f32
    %1 = vector.broadcast %cst : f32 to vector<4x1xf32>
    %2 = arith.mulf %0, %1 : vector<4x1xf32>
    %c0_1 = arith.constant 0 : index
    %c0_2 = arith.constant 0 : index
    %3 = vector.load %arg3[%c0_1, %c0_2] : memref<4x1xf32, #tpu.memory_space<vmem>>, vector<4x1xf32>
    %cst_3 = arith.constant 9.765625E-4 : f32
    %4 = vector.broadcast %cst_3 : f32 to vector<4x1xf32>
    %5 = arith.mulf %3, %4 : vector<4x1xf32>
    %6 = arith.mulf %2, %2 : vector<4x1xf32>
    %7 = arith.subf %5, %6 : vector<4x1xf32>
    %cst_4 = arith.constant 0.000000e+00 : f32
    %8 = vector.broadcast %cst_4 : f32 to vector<4x1xf32>
    %9 = arith.maximumf %7, %8 : vector<4x1xf32>
    %c0_5 = arith.constant 0 : index
    %c0_6 = arith.constant 0 : index
    %10 = vector.load %arg4[%c0_5, %c0_6] : memref<4x1xf32, #tpu.memory_space<vmem>>, vector<4x1xf32>
    %cst_7 = arith.constant 9.99999974E-6 : f32
    %11 = vector.broadcast %cst_7 : f32 to vector<4x1xf32>
    %12 = arith.addf %9, %11 : vector<4x1xf32>
    %13 = math.rsqrt %12 : vector<4x1xf32>
    %14 = arith.mulf %10, %13 : vector<4x1xf32>
    %c0_8 = arith.constant 0 : index
    %c0_9 = arith.constant 0 : index
    %15 = vector.load %arg5[%c0_8, %c0_9] : memref<4x1xf32, #tpu.memory_space<vmem>>, vector<4x1xf32>
    %16 = arith.mulf %2, %14 : vector<4x1xf32>
    %17 = arith.subf %15, %16 : vector<4x1xf32>
    %c0_10 = arith.constant 0 : index
    %c0_11 = arith.constant 0 : index
    %18 = vector.load %arg1[%c0_10, %c0_11] : memref<4x1024xf32, #tpu.memory_space<vmem>>, vector<4x1024xf32>
    %19 = vector.broadcast %14 : vector<4x1xf32> to vector<4x1024xf32>
    %20 = arith.mulf %18, %19 : vector<4x1024xf32>
    %21 = vector.broadcast %17 : vector<4x1xf32> to vector<4x1024xf32>
    %22 = arith.addf %20, %21 : vector<4x1024xf32>
    %cst_12 = arith.constant 0.000000e+00 : f32
    %23 = vector.broadcast %cst_12 : f32 to vector<4x1024xf32>
    %24 = arith.cmpf oge, %22, %23 : vector<4x1024xf32>
    %cst_13 = arith.constant 0.00999999977 : f32
    %25 = vector.broadcast %cst_13 : f32 to vector<4x1024xf32>
    %26 = arith.mulf %25, %22 : vector<4x1024xf32>
    %27 = arith.select %24, %22, %26 : vector<4x1024xi1>, vector<4x1024xf32>
    %28 = arith.truncf %27 : vector<4x1024xf32> to vector<4x1024xbf16>
    %c0_14 = arith.constant 0 : index
    %c0_15 = arith.constant 0 : index
    %29 = vector.load %arg6[%c0_14, %c0_15] : memref<4x1024xbf16, #tpu.memory_space<vmem>>, vector<4x1024xbf16>
    tpu.vector_store %arg6[%c0_14, %c0_15], %28 {strides = array<i32>} : memref<4x1024xbf16, #tpu.memory_space<vmem>>, vector<4x1024xbf16>,
    return
  }
  func.func @transform_0(%arg0: i32) -> (i32, i32) {
    %c0_i32 = arith.constant 0 : i32
    %c0_i32_0 = arith.constant 0 : i32
    return %c0_i32, %arg0 : i32, i32
  }
  func.func @transform_1(%arg0: i32) -> (i32, i32) {
    %c0_i32 = arith.constant 0 : i32
    %c0_i32_0 = arith.constant 0 : i32
    %c0_i32_1 = arith.constant 0 : i32
    return %c0_i32, %c0_i32_0 : i32, i32
  }
  func.func @transform_2(%arg0: i32) -> (i32, i32) {
    %c0_i32 = arith.constant 0 : i32
    %c0_i32_0 = arith.constant 0 : i32
    %c0_i32_1 = arith.constant 0 : i32
    return %c0_i32, %c0_i32_0 : i32, i32
  }
  func.func @transform_3(%arg0: i32) -> (i32, i32) {
    %c0_i32 = arith.constant 0 : i32
    %c0_i32_0 = arith.constant 0 : i32
    %c0_i32_1 = arith.constant 0 : i32
    return %c0_i32, %c0_i32_0 : i32, i32
  }
  func.func @transform_4(%arg0: i32) -> (i32, i32) {
    %c0_i32 = arith.constant 0 : i32
    %c0_i32_0 = arith.constant 0 : i32
    %c0_i32_1 = arith.constant 0 : i32
    return %c0_i32, %c0_i32_0 : i32, i32
  }
  func.func @transform_5(%arg0: i32) -> (i32, i32) {
    %c0_i32 = arith.constant 0 : i32
    %c0_i32_0 = arith.constant 0 : i32
    return %c0_i32, %arg0 : i32, i32
  }
}

module attributes {stable_mosaic.version = 11 : i64} {
  func.func @_bn_lrelu_kernel(%arg0: i32, %arg1: memref<8x1024xf32, #tpu.memory_space<vmem>>, %arg2: memref<8x1xf32, #tpu.memory_space<vmem>>, %arg3: memref<8x1xf32, #tpu.memory_space<vmem>>, %arg4: memref<8x1xf32, #tpu.memory_space<vmem>>, %arg5: memref<8x1xf32, #tpu.memory_space<vmem>>, %arg6: memref<8x1024xf32, #tpu.memory_space<vmem>>) attributes {dimension_semantics = [#tpu.dimension_semantics<parallel>], iteration_bounds = array<i64: 1>, scalar_prefetch = 0 : i64, scratch_operands = 0 : i64, tpu.core_type = #tpu.core_type<tc>, window_params = [{transform_indices = @transform_0, window_bounds = array<i64: 8, 1024>}, {pipeline_mode = #tpu.pipeline_mode<synchronous>, transform_indices = @transform_1, window_bounds = array<i64: 8, 1>}, {pipeline_mode = #tpu.pipeline_mode<synchronous>, transform_indices = @transform_2, window_bounds = array<i64: 8, 1>}, {pipeline_mode = #tpu.pipeline_mode<synchronous>, transform_indices = @transform_3, window_bounds = array<i64: 8, 1>}, {pipeline_mode = #tpu.pipeline_mode<synchronous>, transform_indices = @transform_4, window_bounds = array<i64: 8, 1>}, {transform_indices = @transform_5, window_bounds = array<i64: 8, 1024>}]} {
    %c0 = arith.constant 0 : index
    %c0_0 = arith.constant 0 : index
    %0 = vector.load %arg2[%c0, %c0_0] : memref<8x1xf32, #tpu.memory_space<vmem>>, vector<8x1xf32>
    %cst = arith.constant 9.765625E-4 : f32
    %1 = vector.broadcast %cst : f32 to vector<8x1xf32>
    %2 = arith.mulf %0, %1 : vector<8x1xf32>
    %c0_1 = arith.constant 0 : index
    %c0_2 = arith.constant 0 : index
    %3 = vector.load %arg3[%c0_1, %c0_2] : memref<8x1xf32, #tpu.memory_space<vmem>>, vector<8x1xf32>
    %cst_3 = arith.constant 9.765625E-4 : f32
    %4 = vector.broadcast %cst_3 : f32 to vector<8x1xf32>
    %5 = arith.mulf %3, %4 : vector<8x1xf32>
    %6 = arith.mulf %2, %2 : vector<8x1xf32>
    %7 = arith.subf %5, %6 : vector<8x1xf32>
    %cst_4 = arith.constant 0.000000e+00 : f32
    %8 = vector.broadcast %cst_4 : f32 to vector<8x1xf32>
    %9 = arith.maximumf %7, %8 : vector<8x1xf32>
    %c0_5 = arith.constant 0 : index
    %c0_6 = arith.constant 0 : index
    %10 = vector.load %arg4[%c0_5, %c0_6] : memref<8x1xf32, #tpu.memory_space<vmem>>, vector<8x1xf32>
    %cst_7 = arith.constant 9.99999974E-6 : f32
    %11 = vector.broadcast %cst_7 : f32 to vector<8x1xf32>
    %12 = arith.addf %9, %11 : vector<8x1xf32>
    %13 = math.rsqrt %12 : vector<8x1xf32>
    %14 = arith.mulf %10, %13 : vector<8x1xf32>
    %c0_8 = arith.constant 0 : index
    %c0_9 = arith.constant 0 : index
    %15 = vector.load %arg5[%c0_8, %c0_9] : memref<8x1xf32, #tpu.memory_space<vmem>>, vector<8x1xf32>
    %16 = arith.mulf %2, %14 : vector<8x1xf32>
    %17 = arith.subf %15, %16 : vector<8x1xf32>
    %c0_10 = arith.constant 0 : index
    %c0_11 = arith.constant 0 : index
    %18 = vector.load %arg1[%c0_10, %c0_11] : memref<8x1024xf32, #tpu.memory_space<vmem>>, vector<8x1024xf32>
    %19 = vector.broadcast %14 : vector<8x1xf32> to vector<8x1024xf32>
    %20 = arith.mulf %18, %19 : vector<8x1024xf32>
    %21 = vector.broadcast %17 : vector<8x1xf32> to vector<8x1024xf32>
    %22 = arith.addf %20, %21 : vector<8x1024xf32>
    %cst_12 = arith.constant 0.000000e+00 : f32
    %23 = vector.broadcast %cst_12 : f32 to vector<8x1024xf32>
    %24 = arith.cmpf oge, %22, %23 : vector<8x1024xf32>
    %cst_13 = arith.constant 0.00999999977 : f32
    %25 = vector.broadcast %cst_13 : f32 to vector<8x1024xf32>
    %26 = arith.mulf %25, %22 : vector<8x1024xf32>
    %27 = arith.select %24, %22, %26 : vector<8x1024xi1>, vector<8x1024xf32>
    %c0_14 = arith.constant 0 : index
    %c0_15 = arith.constant 0 : index
    %28 = vector.load %arg6[%c0_14, %c0_15] : memref<8x1024xf32, #tpu.memory_space<vmem>>, vector<8x1024xf32>
    tpu.vector_store %arg6[%c0_14, %c0_15], %27 {strides = array<i32>} : memref<8x1024xf32, #tpu.memory_space<vmem>>, vector<8x1024xf32>,
    return
  }
  func.func @transform_0(%arg0: i32) -> (i32, i32) {
    %c0_i32 = arith.constant 0 : i32
    %c0_i32_0 = arith.constant 0 : i32
    return %c0_i32, %arg0 : i32, i32
  }
  func.func @transform_1(%arg0: i32) -> (i32, i32) {
    %c0_i32 = arith.constant 0 : i32
    %c0_i32_0 = arith.constant 0 : i32
    %c0_i32_1 = arith.constant 0 : i32
    return %c0_i32, %c0_i32_0 : i32, i32
  }
  func.func @transform_2(%arg0: i32) -> (i32, i32) {
    %c0_i32 = arith.constant 0 : i32
    %c0_i32_0 = arith.constant 0 : i32
    %c0_i32_1 = arith.constant 0 : i32
    return %c0_i32, %c0_i32_0 : i32, i32
  }
  func.func @transform_3(%arg0: i32) -> (i32, i32) {
    %c0_i32 = arith.constant 0 : i32
    %c0_i32_0 = arith.constant 0 : i32
    %c0_i32_1 = arith.constant 0 : i32
    return %c0_i32, %c0_i32_0 : i32, i32
  }
  func.func @transform_4(%arg0: i32) -> (i32, i32) {
    %c0_i32 = arith.constant 0 : i32
    %c0_i32_0 = arith.constant 0 : i32
    %c0_i32_1 = arith.constant 0 : i32
    return %c0_i32, %c0_i32_0 : i32, i32
  }
  func.func @transform_5(%arg0: i32) -> (i32, i32) {
    %c0_i32 = arith.constant 0 : i32
    %c0_i32_0 = arith.constant 0 : i32
    return %c0_i32, %arg0 : i32, i32
  }
}

module attributes {stable_mosaic.version = 11 : i64} {
  func.func @_conv_stats_kernel(%arg0: i32, %arg1: memref<8x108xbf16, #tpu.memory_space<vmem>>, %arg2: memref<108x1024xbf16, #tpu.memory_space<vmem>>, %arg3: memref<8x1024xf32, #tpu.memory_space<vmem>>, %arg4: memref<8x1xf32, #tpu.memory_space<vmem>>, %arg5: memref<8x1xf32, #tpu.memory_space<vmem>>) attributes {dimension_semantics = [#tpu.dimension_semantics<arbitrary>], iteration_bounds = array<i64: 1>, scalar_prefetch = 0 : i64, scratch_operands = 0 : i64, tpu.core_type = #tpu.core_type<tc>, window_params = [{pipeline_mode = #tpu.pipeline_mode<synchronous>, transform_indices = @transform_0, window_bounds = array<i64: 8, 108>}, {transform_indices = @transform_1, window_bounds = array<i64: 108, 1024>}, {transform_indices = @transform_2, window_bounds = array<i64: 8, 1024>}, {pipeline_mode = #tpu.pipeline_mode<synchronous>, transform_indices = @transform_3, window_bounds = array<i64: 8, 1>}, {pipeline_mode = #tpu.pipeline_mode<synchronous>, transform_indices = @transform_4, window_bounds = array<i64: 8, 1>}]} {
    %c0 = arith.constant 0 : index
    %c0_0 = arith.constant 0 : index
    %0 = vector.load %arg1[%c0, %c0_0] : memref<8x108xbf16, #tpu.memory_space<vmem>>, vector<8x108xbf16>
    %c0_1 = arith.constant 0 : index
    %c0_2 = arith.constant 0 : index
    %1 = vector.load %arg2[%c0_1, %c0_2] : memref<108x1024xbf16, #tpu.memory_space<vmem>>, vector<108x1024xbf16>
    %cst = arith.constant dense<0.000000e+00> : vector<8x1024xf32>
    %2 = tpu.matmul %0, %1, %cst {dimension_numbers = #tpu.dot_dimension_numbers<[1], [0], [0], [1], [0, 0, 1, 1], [], []>} : vector<8x108xbf16>, vector<108x1024xbf16>, vector<8x1024xf32> -> vector<8x1024xf32>
    %c0_3 = arith.constant 0 : index
    %c0_4 = arith.constant 0 : index
    %3 = vector.load %arg3[%c0_3, %c0_4] : memref<8x1024xf32, #tpu.memory_space<vmem>>, vector<8x1024xf32>
    tpu.vector_store %arg3[%c0_3, %c0_4], %2 {strides = array<i32>} : memref<8x1024xf32, #tpu.memory_space<vmem>>, vector<8x1024xf32>,
    %c0_i32 = arith.constant 0 : i32
    %4 = arith.cmpi eq, %arg0, %c0_i32 : i32
    %5 = arith.extui %4 : i1 to i32
    %c0_i32_5 = arith.constant 0 : i32
    %6 = arith.cmpi ne, %5, %c0_i32_5 : i32
    scf.if %6 {
      %cst_16 = arith.constant 0.000000e+00 : f32
      %18 = vector.broadcast %cst_16 : f32 to vector<8x1xf32>
      %c0_17 = arith.constant 0 : index
      %c0_18 = arith.constant 0 : index
      %19 = vector.load %arg4[%c0_17, %c0_18] : memref<8x1xf32, #tpu.memory_space<vmem>>, vector<8x1xf32>
      tpu.vector_store %arg4[%c0_17, %c0_18], %18 {strides = array<i32>} : memref<8x1xf32, #tpu.memory_space<vmem>>, vector<8x1xf32>,
      %cst_19 = arith.constant 0.000000e+00 : f32
      %20 = vector.broadcast %cst_19 : f32 to vector<8x1xf32>
      %c0_20 = arith.constant 0 : index
      %c0_21 = arith.constant 0 : index
      %21 = vector.load %arg5[%c0_20, %c0_21] : memref<8x1xf32, #tpu.memory_space<vmem>>, vector<8x1xf32>
      tpu.vector_store %arg5[%c0_20, %c0_21], %20 {strides = array<i32>} : memref<8x1xf32, #tpu.memory_space<vmem>>, vector<8x1xf32>,
    } else {
    }
    %c0_6 = arith.constant 0 : index
    %c0_7 = arith.constant 0 : index
    %7 = vector.load %arg4[%c0_6, %c0_7] : memref<8x1xf32, #tpu.memory_space<vmem>>, vector<8x1xf32>
    %cst_8 = arith.constant dense<0.000000e+00> : vector<8xf32>
    %8 = vector.multi_reduction <add>, %2, %cst_8 [1] : vector<8x1024xf32> to vector<8xf32>
    %9 = vector.shape_cast %8 : vector<8xf32> to vector<8x1xf32>
    %10 = arith.addf %7, %9 : vector<8x1xf32>
    %c0_9 = arith.constant 0 : index
    %c0_10 = arith.constant 0 : index
    %11 = vector.load %arg4[%c0_9, %c0_10] : memref<8x1xf32, #tpu.memory_space<vmem>>, vector<8x1xf32>
    tpu.vector_store %arg4[%c0_9, %c0_10], %10 {strides = array<i32>} : memref<8x1xf32, #tpu.memory_space<vmem>>, vector<8x1xf32>,
    %c0_11 = arith.constant 0 : index
    %c0_12 = arith.constant 0 : index
    %12 = vector.load %arg5[%c0_11, %c0_12] : memref<8x1xf32, #tpu.memory_space<vmem>>, vector<8x1xf32>
    %13 = arith.mulf %2, %2 : vector<8x1024xf32>
    %cst_13 = arith.constant dense<0.000000e+00> : vector<8xf32>
    %14 = vector.multi_reduction <add>, %13, %cst_13 [1] : vector<8x1024xf32> to vector<8xf32>
    %15 = vector.shape_cast %14 : vector<8xf32> to vector<8x1xf32>
    %16 = arith.addf %12, %15 : vector<8x1xf32>
    %c0_14 = arith.constant 0 : index
    %c0_15 = arith.constant 0 : index
    %17 = vector.load %arg5[%c0_14, %c0_15] : memref<8x1xf32, #tpu.memory_space<vmem>>, vector<8x1xf32>
    tpu.vector_store %arg5[%c0_14, %c0_15], %16 {strides = array<i32>} : memref<8x1xf32, #tpu.memory_space<vmem>>, vector<8x1xf32>,
    return
  }
  func.func @transform_0(%arg0: i32) -> (i32, i32) {
    %c0_i32 = arith.constant 0 : i32
    %c0_i32_0 = arith.constant 0 : i32
    %c0_i32_1 = arith.constant 0 : i32
    return %c0_i32, %c0_i32_0 : i32, i32
  }
  func.func @transform_1(%arg0: i32) -> (i32, i32) {
    %c0_i32 = arith.constant 0 : i32
    %c0_i32_0 = arith.constant 0 : i32
    return %c0_i32, %arg0 : i32, i32
  }
  func.func @transform_2(%arg0: i32) -> (i32, i32) {
    %c0_i32 = arith.constant 0 : i32
    %c0_i32_0 = arith.constant 0 : i32
    return %c0_i32, %arg0 : i32, i32
  }
  func.func @transform_3(%arg0: i32) -> (i32, i32) {
    %c0_i32 = arith.constant 0 : i32
    %c0_i32_0 = arith.constant 0 : i32
    %c0_i32_1 = arith.constant 0 : i32
    return %c0_i32, %c0_i32_0 : i32, i32
  }
  func.func @transform_4(%arg0: i32) -> (i32, i32) {
    %c0_i32 = arith.constant 0 : i32
    %c0_i32_0 = arith.constant 0 : i32
    %c0_i32_1 = arith.constant 0 : i32
    return %c0_i32, %c0_i32_0 : i32, i32
  }
}

module attributes {stable_mosaic.version = 11 : i64} {
  func.func @_conv_stats_kernel(%arg0: i32, %arg1: memref<4x36xbf16, #tpu.memory_space<vmem>>, %arg2: memref<36x1024xbf16, #tpu.memory_space<vmem>>, %arg3: memref<4x1024xf32, #tpu.memory_space<vmem>>, %arg4: memref<4x1xf32, #tpu.memory_space<vmem>>, %arg5: memref<4x1xf32, #tpu.memory_space<vmem>>) attributes {dimension_semantics = [#tpu.dimension_semantics<arbitrary>], iteration_bounds = array<i64: 1>, scalar_prefetch = 0 : i64, scratch_operands = 0 : i64, tpu.core_type = #tpu.core_type<tc>, window_params = [{pipeline_mode = #tpu.pipeline_mode<synchronous>, transform_indices = @transform_0, window_bounds = array<i64: 4, 36>}, {transform_indices = @transform_1, window_bounds = array<i64: 36, 1024>}, {transform_indices = @transform_2, window_bounds = array<i64: 4, 1024>}, {pipeline_mode = #tpu.pipeline_mode<synchronous>, transform_indices = @transform_3, window_bounds = array<i64: 4, 1>}, {pipeline_mode = #tpu.pipeline_mode<synchronous>, transform_indices = @transform_4, window_bounds = array<i64: 4, 1>}]} {
    %c0 = arith.constant 0 : index
    %c0_0 = arith.constant 0 : index
    %0 = vector.load %arg1[%c0, %c0_0] : memref<4x36xbf16, #tpu.memory_space<vmem>>, vector<4x36xbf16>
    %c0_1 = arith.constant 0 : index
    %c0_2 = arith.constant 0 : index
    %1 = vector.load %arg2[%c0_1, %c0_2] : memref<36x1024xbf16, #tpu.memory_space<vmem>>, vector<36x1024xbf16>
    %cst = arith.constant dense<0.000000e+00> : vector<4x1024xf32>
    %2 = tpu.matmul %0, %1, %cst {dimension_numbers = #tpu.dot_dimension_numbers<[1], [0], [0], [1], [0, 0, 1, 1], [], []>} : vector<4x36xbf16>, vector<36x1024xbf16>, vector<4x1024xf32> -> vector<4x1024xf32>
    %c0_3 = arith.constant 0 : index
    %c0_4 = arith.constant 0 : index
    %3 = vector.load %arg3[%c0_3, %c0_4] : memref<4x1024xf32, #tpu.memory_space<vmem>>, vector<4x1024xf32>
    tpu.vector_store %arg3[%c0_3, %c0_4], %2 {strides = array<i32>} : memref<4x1024xf32, #tpu.memory_space<vmem>>, vector<4x1024xf32>,
    %c0_i32 = arith.constant 0 : i32
    %4 = arith.cmpi eq, %arg0, %c0_i32 : i32
    %5 = arith.extui %4 : i1 to i32
    %c0_i32_5 = arith.constant 0 : i32
    %6 = arith.cmpi ne, %5, %c0_i32_5 : i32
    scf.if %6 {
      %cst_16 = arith.constant 0.000000e+00 : f32
      %18 = vector.broadcast %cst_16 : f32 to vector<4x1xf32>
      %c0_17 = arith.constant 0 : index
      %c0_18 = arith.constant 0 : index
      %19 = vector.load %arg4[%c0_17, %c0_18] : memref<4x1xf32, #tpu.memory_space<vmem>>, vector<4x1xf32>
      tpu.vector_store %arg4[%c0_17, %c0_18], %18 {strides = array<i32>} : memref<4x1xf32, #tpu.memory_space<vmem>>, vector<4x1xf32>,
      %cst_19 = arith.constant 0.000000e+00 : f32
      %20 = vector.broadcast %cst_19 : f32 to vector<4x1xf32>
      %c0_20 = arith.constant 0 : index
      %c0_21 = arith.constant 0 : index
      %21 = vector.load %arg5[%c0_20, %c0_21] : memref<4x1xf32, #tpu.memory_space<vmem>>, vector<4x1xf32>
      tpu.vector_store %arg5[%c0_20, %c0_21], %20 {strides = array<i32>} : memref<4x1xf32, #tpu.memory_space<vmem>>, vector<4x1xf32>,
    } else {
    }
    %c0_6 = arith.constant 0 : index
    %c0_7 = arith.constant 0 : index
    %7 = vector.load %arg4[%c0_6, %c0_7] : memref<4x1xf32, #tpu.memory_space<vmem>>, vector<4x1xf32>
    %cst_8 = arith.constant dense<0.000000e+00> : vector<4xf32>
    %8 = vector.multi_reduction <add>, %2, %cst_8 [1] : vector<4x1024xf32> to vector<4xf32>
    %9 = vector.shape_cast %8 : vector<4xf32> to vector<4x1xf32>
    %10 = arith.addf %7, %9 : vector<4x1xf32>
    %c0_9 = arith.constant 0 : index
    %c0_10 = arith.constant 0 : index
    %11 = vector.load %arg4[%c0_9, %c0_10] : memref<4x1xf32, #tpu.memory_space<vmem>>, vector<4x1xf32>
    tpu.vector_store %arg4[%c0_9, %c0_10], %10 {strides = array<i32>} : memref<4x1xf32, #tpu.memory_space<vmem>>, vector<4x1xf32>,
    %c0_11 = arith.constant 0 : index
    %c0_12 = arith.constant 0 : index
    %12 = vector.load %arg5[%c0_11, %c0_12] : memref<4x1xf32, #tpu.memory_space<vmem>>, vector<4x1xf32>
    %13 = arith.mulf %2, %2 : vector<4x1024xf32>
    %cst_13 = arith.constant dense<0.000000e+00> : vector<4xf32>
    %14 = vector.multi_reduction <add>, %13, %cst_13 [1] : vector<4x1024xf32> to vector<4xf32>
    %15 = vector.shape_cast %14 : vector<4xf32> to vector<4x1xf32>
    %16 = arith.addf %12, %15 : vector<4x1xf32>
    %c0_14 = arith.constant 0 : index
    %c0_15 = arith.constant 0 : index
    %17 = vector.load %arg5[%c0_14, %c0_15] : memref<4x1xf32, #tpu.memory_space<vmem>>, vector<4x1xf32>
    tpu.vector_store %arg5[%c0_14, %c0_15], %16 {strides = array<i32>} : memref<4x1xf32, #tpu.memory_space<vmem>>, vector<4x1xf32>,
    return
  }
  func.func @transform_0(%arg0: i32) -> (i32, i32) {
    %c0_i32 = arith.constant 0 : i32
    %c0_i32_0 = arith.constant 0 : i32
    %c0_i32_1 = arith.constant 0 : i32
    return %c0_i32, %c0_i32_0 : i32, i32
  }
  func.func @transform_1(%arg0: i32) -> (i32, i32) {
    %c0_i32 = arith.constant 0 : i32
    %c0_i32_0 = arith.constant 0 : i32
    return %c0_i32, %arg0 : i32, i32
  }
  func.func @transform_2(%arg0: i32) -> (i32, i32) {
    %c0_i32 = arith.constant 0 : i32
    %c0_i32_0 = arith.constant 0 : i32
    return %c0_i32, %arg0 : i32, i32
  }
  func.func @transform_3(%arg0: i32) -> (i32, i32) {
    %c0_i32 = arith.constant 0 : i32
    %c0_i32_0 = arith.constant 0 : i32
    %c0_i32_1 = arith.constant 0 : i32
    return %c0_i32, %c0_i32_0 : i32, i32
  }
  func.func @transform_4(%arg0: i32) -> (i32, i32) {
    %c0_i32 = arith.constant 0 : i32
    %c0_i32_0 = arith.constant 0 : i32
    %c0_i32_1 = arith.constant 0 : i32
    return %c0_i32, %c0_i32_0 : i32, i32
  }
}

module attributes {stable_mosaic.version = 11 : i64} {
  func.func @_max3_kernel(%arg0: i32, %arg1: memref<8x512xf32, #tpu.memory_space<vmem>>, %arg2: memref<8x512xf32, #tpu.memory_space<vmem>>, %arg3: memref<8x512xf32, #tpu.memory_space<vmem>>, %arg4: memref<8x512xf32, #tpu.memory_space<vmem>>) attributes {dimension_semantics = [#tpu.dimension_semantics<parallel>], iteration_bounds = array<i64: 1>, scalar_prefetch = 0 : i64, scratch_operands = 0 : i64, tpu.core_type = #tpu.core_type<tc>, window_params = [{transform_indices = @transform_0, window_bounds = array<i64: 8, 512>}, {transform_indices = @transform_1, window_bounds = array<i64: 8, 512>}, {transform_indices = @transform_2, window_bounds = array<i64: 8, 512>}, {transform_indices = @transform_3, window_bounds = array<i64: 8, 512>}]} {
    %c0 = arith.constant 0 : index
    %c0_0 = arith.constant 0 : index
    %0 = vector.load %arg1[%c0, %c0_0] : memref<8x512xf32, #tpu.memory_space<vmem>>, vector<8x512xf32>
    %c0_1 = arith.constant 0 : index
    %c0_2 = arith.constant 0 : index
    %1 = vector.load %arg2[%c0_1, %c0_2] : memref<8x512xf32, #tpu.memory_space<vmem>>, vector<8x512xf32>
    %2 = arith.maximumf %0, %1 : vector<8x512xf32>
    %c0_3 = arith.constant 0 : index
    %c0_4 = arith.constant 0 : index
    %3 = vector.load %arg3[%c0_3, %c0_4] : memref<8x512xf32, #tpu.memory_space<vmem>>, vector<8x512xf32>
    %4 = arith.maximumf %2, %3 : vector<8x512xf32>
    %c0_5 = arith.constant 0 : index
    %c0_6 = arith.constant 0 : index
    %5 = vector.load %arg4[%c0_5, %c0_6] : memref<8x512xf32, #tpu.memory_space<vmem>>, vector<8x512xf32>
    tpu.vector_store %arg4[%c0_5, %c0_6], %4 {strides = array<i32>} : memref<8x512xf32, #tpu.memory_space<vmem>>, vector<8x512xf32>,
    return
  }
  func.func @transform_0(%arg0: i32) -> (i32, i32) {
    %c0_i32 = arith.constant 0 : i32
    %c0_i32_0 = arith.constant 0 : i32
    return %c0_i32, %arg0 : i32, i32
  }
  func.func @transform_1(%arg0: i32) -> (i32, i32) {
    %c0_i32 = arith.constant 0 : i32
    %c0_i32_0 = arith.constant 0 : i32
    return %c0_i32, %arg0 : i32, i32
  }
  func.func @transform_2(%arg0: i32) -> (i32, i32) {
    %c0_i32 = arith.constant 0 : i32
    %c0_i32_0 = arith.constant 0 : i32
    return %c0_i32, %arg0 : i32, i32
  }
  func.func @transform_3(%arg0: i32) -> (i32, i32) {
    %c0_i32 = arith.constant 0 : i32
    %c0_i32_0 = arith.constant 0 : i32
    return %c0_i32, %arg0 : i32, i32
  }
}

</mosaic_0001>

<bundles_post_ra>
// kernel: forward.18
= control target key start
LH: loop header
LB: loop body
LE: loop exit
PB: predicated region body
PF: predicated region fallthrough
CT: control target
= control target key end

     0   :  { %v156_v0 = vmov 0   ;;  %v157_v21 = vmov 839922192   ;;  %vm126_vm7 = vcmask 1041408   ;;  %vm130_vm8 = vcmask 1045508   ;;  %s224_s1 = inlined_call_operand.vmem [shape: f32[4,1], index: 1, kind: input, shape index: {}]   ;;  %s225_s2 = inlined_call_operand.vmem [shape: f32[4,1], index: 2, kind: input, shape index: {}]   ;;  %s226_s3 = inlined_call_operand.vmem [shape: f32[4,1], index: 3, kind: input, shape index: {}]   ;;  %s227_s4 = inlined_call_operand.vmem [shape: f32[4,1], index: 4, kind: input, shape index: {}]   ;;  %s228_s0 = inlined_call_operand.vmem [shape: f32[4,1024], index: 0, kind: input, shape index: {}]   ;;  %s229_s5 = inlined_call_operand.vmem [shape: bf16[4,1024], index: 5, kind: output, shape index: {}]  }
   0x1   :  { %153 = vset.pattern.permute.xlu0 %v156_v0  ;;  %v20_v1 = vld [vmem:[%s224_s1] sm:$0xf]  ;;  %v52_v22 = vunpack.c.l.s4 %v157_v21  ;;  %v44_v27 = vld [vmem:[%s228_s0 + $0x8] sm:$0xff]  ;;  %v45_v28 = vld [vmem:[%s228_s0 + $0x10] sm:$0xff]  ;;  %vm134_vm9 = vcmask 1043456  }
   0x2   :  { %v22_v2 = vld [vmem:[%s225_s2] sm:$0xf]  ;;  %v21_v3 = vmul.f32 0.0009765625, %v20_v1  ;;  %v46_v29 = vld [vmem:[%s228_s0 + $0x18] sm:$0xff] }
   0x3   :  { %v23_v4 = vmul.f32 0.0009765625, %v22_v2  ;;  %v27_v14 = vld [vmem:[%s226_s3] sm:$0xf]  ;;  %v53_v23 = vunpack.c.0.s8 %v52_v22 }
   0x4   :  { %v24_v5 = vmul.f32 %v21_v3, %v21_v3  ;;  %v40_v19 = vld [vmem:[%s227_s4] sm:$0xf] }
   0x5   :  { %v43_v26 = vld [vmem:[%s228_s0] sm:$0xff] }
   0x6   :  { %v25_v6 = vsub.f32 %v23_v4, %v24_v5 }
   0x8   :  { %v26_v7 = vmax.f32 %v25_v6, 0.0 }
   0xa   :  { %v28_v8 = vadd.f32 1e-05, %v26_v7 }
   0xc   :  { %154 = vrsqrt.f32 %v28_v8  ;;  %vm35_vm0 = vweird.f32 %v28_v8 }
  0x12   :  { %v155_v9 = vpop.eup %154 }
  0x13   :  { %v30_v10 = vmul.f32 %v155_v9, %v28_v8  ;;  %vm36_vm1 = vweird.f32 %v155_v9 }
  0x14   :  { %vm37_vm2 = vmor %vm35_vm0, %vm36_vm1 }
  0x15   :  { %v31_v11 = vmul.f32 %v155_v9, %v30_v10 }
  0x17   :  { %v32_v12 = vmul.f32 0.5, %v31_v11 }
  0x19   :  { %v33_v13 = vsub.f32 1.5, %v32_v12 }
  0x1b   :  { %v34_v15 = vmul.f32 %v155_v9, %v33_v13 }
  0x1d   :  { %v38_v16 = vsel %vm37_vm2, %v155_v9, %v34_v15 }
  0x1e   :  { %v39_v17 = vmul.f32 %v38_v16, %v27_v14 }
  0x20   :  { %49 = vperm.xlu0 %153, %v39_v17   ;;  %v41_v18 = vmul.f32 %v39_v17, %v21_v3 }
  0x22   :  { %v42_v20 = vsub.f32 %v40_v19, %v41_v18 }
  0x28   :  { %62 = vperm.xlu0 %153, %v42_v20  }
  0x92   :  { %v50_v24 = vpop.permute.xlu0 %49 }
  0x93   :  { %v54_v25 = vperm.slane %v50_v24, %v53_v23 }
  0x95   :  { %v56_v30 = vmul.f32 %v54_v25, %v43_v26  ;;  %v57_v32 = vmul.f32 %v54_v25, %v44_v27  ;;  %v58_v33 = vmul.f32 %v54_v25, %v45_v28  ;;  %v59_v34 = vmul.f32 %v54_v25, %v46_v29 }
  0x9a   :  { %v63_v31 = vpop.permute.xlu0 %62 }
  0x9b   :  { %v67_v35 = vperm.slane %v63_v31, %v53_v23 }
  0x9d   :  { %v69_v36 = vadd.f32 %v67_v35, %v56_v30  ;;  %v70_v37 = vadd.f32 %v67_v35, %v57_v32  ;;  %v71_v38 = vadd.f32 %v67_v35, %v58_v33  ;;  %v72_v39 = vadd.f32 %v67_v35, %v59_v34 }
  0x9f   :  { %vm73_vm3 = vcmp.ge.f32.partialorder %v69_v36, 0.0  ;;  %vm74_vm4 = vcmp.ge.f32.partialorder %v70_v37, 0.0  ;;  %vm75_vm5 = vcmp.ge.f32.partialorder %v71_v38, 0.0  ;;  %vm76_vm6 = vcmp.ge.f32.partialorder %v72_v39, 0.0 }
  0xa0   :  { %v77_v40 = vmul.f32 0.01, %v69_v36  ;;  %v78_v41 = vmul.f32 0.01, %v70_v37  ;;  %v79_v42 = vmul.f32 0.01, %v71_v38 }
  0xa1   :  { %v80_v43 = vmul.f32 0.01, %v72_v39 }
  0xa2   :  { %v81_v44 = vsel %vm73_vm3, %v69_v36, %v77_v40  ;;  %v82_v45 = vsel %vm74_vm4, %v70_v37, %v78_v41  ;;  %v83_v46 = vsel %vm75_vm5, %v71_v38, %v79_v42 }
  0xa3   :  { %v84_v47 = vsel %vm76_vm6, %v72_v39, %v80_v43  ;;  %89 = vst [vmem:[#allocation1] ss:$2 sm:$0xff] %v81_v44 }
  0xa4   :  { %91 = vst [vmem:[#allocation1 + $0x10] ss:$2 sm:$0xff] %v82_v45 }
  0xa5   :  { %93 = vst [vmem:[#allocation1 + $0x20] ss:$2 sm:$0xff] %v83_v46 }
  0xa6   :  { %95 = vst [vmem:[#allocation1 + $0x30] ss:$2 sm:$0xff] %v84_v47 }
  0xaa   :  { %v96_v48 = vld.sshfl [vmem:[#allocation1] sm:$0xff pattern:$0x75316420]  ;;  %v97_v49 = vld.sshfl [vmem:[#allocation1 + $0x8] sm:$0xff pattern:$0x75316420] }
  0xab   :  { %v98_v50 = vld.sshfl [vmem:[#allocation1 + $0x10] sm:$0xff pattern:$0x75316420]  ;;  %v99_v51 = vld.sshfl [vmem:[#allocation1 + $0x18] sm:$0xff pattern:$0x75316420]  ;;  %v112_v52 = vpack.c.bf16 %v97_v49, %v96_v48 }
  0xac   :  { %v100_v53 = vld.sshfl [vmem:[#allocation1 + $0x20] sm:$0xff pattern:$0x75316420]  ;;  %v101_v54 = vld.sshfl [vmem:[#allocation1 + $0x28] sm:$0xff pattern:$0x75316420]  ;;  %v113_v55 = vpack.c.bf16 %v99_v51, %v98_v50 }
  0xad   :  { %v102_v56 = vld.sshfl [vmem:[#allocation1 + $0x30] sm:$0xff pattern:$0x75316420]  ;;  %v103_v57 = vld.sshfl [vmem:[#allocation1 + $0x38] sm:$0xff pattern:$0x75316420]  ;;  %v114_v58 = vpack.c.bf16 %v101_v54, %v100_v53 }
  0xae   :  { %v115_v59 = vpack.c.bf16 %v103_v57, %v102_v56  ;;  %v120_v60 = vrot.slane %v112_v52, 2  ;;  %v121_v61 = vrot.slane %v113_v55, 4  ;;  %v122_v62 = vrot.slane %v113_v55, 6 }
  0xaf   :  { %v123_v63 = vrot.slane %v114_v58, 2 }
  0xb0   :  { %v124_v0 = vrot.slane %v115_v59, 4  ;;  %v125_v1 = vrot.slane %v115_v59, 6  ;;  %v129_v2 = vsel %vm126_vm7, %v112_v52, %v120_v60  ;;  %v133_v3 = vsel %vm130_vm8, %v121_v61, %v122_v62 }
  0xb1   :  { %v135_v4 = vsel %vm134_vm9, %v129_v2, %v133_v3  ;;  %v138_v5 = vsel %vm126_vm7, %v114_v58, %v123_v63 }
  0xb2   :  { %v141_v6 = vsel %vm130_vm8, %v124_v0, %v125_v1  ;;  %145 = vst [vmem:[%s229_s5] sm:$0xff] %v135_v4 }
  0xb3   :  { %v142_v7 = vsel %vm134_vm9, %v138_v5, %v141_v6 }
  0xb4   :  { %146 = vst [vmem:[%s229_s5 + $0x8] sm:$0xff] %v142_v7 }

// kernel: forward.17
= control target key start
LH: loop header
LB: loop body
LE: loop exit
PB: predicated region body
PF: predicated region fallthrough
CT: control target
= control target key end

     0   :  { %vm35_vm0 = vcmask 1041408   ;;  %vm31_vm1 = vcmask 31744   ;;  %vm168_vm2 = vcmask 1043456   ;;  %vm185_vm3 = vcmask 3072   ;;  %s363_s1 = inlined_call_operand.vmem [shape: bf16[4,1024], index: 1, kind: input, shape index: {}]   ;;  %s364_s0 = inlined_call_operand.vmem [shape: bf16[4,4], index: 0, kind: input, shape index: {}]   ;;  %s365_s2 = inlined_call_operand.vmem [shape: f32[4,1024], index: 2, kind: output, shape index: {0}]   ;;  %s366_s3 = inlined_call_operand.vmem [shape: f32[4,1], index: 3, kind: output, shape index: {1}]   ;;  %s367_s4 = inlined_call_operand.vmem [shape: f32[4,1], index: 4, kind: output, shape index: {2}]  }
   0x1   :  { %v16_v0 = vld [vmem:[%s363_s1] sm:$0xff]  ;;  %v17_v1 = vld [vmem:[%s363_s1 + $0x8] sm:$0xff]  ;;  %v258_v23 = vmov 0.0  }
   0x2   :  { %19 = vst [vmem:[#allocation1] ss:$4 sm:$0xff] %v16_v0  ;;  %v15_v9 = vld [vmem:[%s364_s0] sm:$0x3] }
   0x3   :  { %22 = vst [vmem:[#allocation1 + $0x20] ss:$4 sm:$0xff] %v17_v1 }
   0x4   :  { %186 = vst.msk [vmem:[%s366_s3] sm:$0xf] %vm185_vm3, %v258_v23 }
   0x5   :  { %187 = vst.msk [vmem:[%s367_s4] sm:$0xf] %vm185_vm3, %v258_v23 }
   0x9   :  { %v23_v2 = vld.sshfl [vmem:[#allocation1] sm:$0xff pattern:$0x73625140]  ;;  %v24_v3 = vld.sshfl [vmem:[#allocation1 + $0x8] sm:$0xff pattern:$0x73625140] }
   0xa   :  { %v36_v4 = vsel %vm35_vm0, %v23_v2, 0  ;;  %v38_v5 = vsel %vm35_vm0, %v24_v3, 0  ;;  %v25_v6 = vld.sshfl [vmem:[#allocation1 + $0x10] sm:$0xff pattern:$0x73625140] }
   0xb   :  { %59 = vmatpush.bf16.msra.mxu0 %v36_v4  ;;  %72 = vmatpush.bf16.msra.mxu1 %v38_v5  ;;  %v40_v7 = vsel %vm35_vm0, %v25_v6, 0  ;;  %v26_v8 = vld.sshfl [vmem:[#allocation1 + $0x18] sm:$0xff pattern:$0x73625140] }
   0xc   :  { %85 = vmatpush.bf16.msra.mxu2 %v40_v7  ;;  %v42_v10 = vsel %vm35_vm0, %v26_v8, 0  ;;  %v29_v11 = vld.sshfl [vmem:[#allocation1 + $0x30] sm:$0xff pattern:$0x73625140] }
   0xd   :  { %98 = vmatpush.bf16.msra.mxu3 %v42_v10  ;;  %v48_v12 = vsel %vm35_vm0, %v29_v11, 0  ;;  %v27_v13 = vld.sshfl [vmem:[#allocation1 + $0x20] sm:$0xff pattern:$0x73625140] }
   0xe   :  { %249 = vmatmul.msk.bf16.vlgmr.msra.gmra.mxu0 %vm31_vm1, %v15_v9  ;;  %250 = vmatmul.msk.bf16.vlgmr.msra.gmra.mxu1 %vm31_vm1, %v15_v9  ;;  %v44_v14 = vsel %vm35_vm0, %v27_v13, 0  ;;  %v30_v15 = vld.sshfl [vmem:[#allocation1 + $0x38] sm:$0xff pattern:$0x73625140] }
   0xf   :  { %251 = vmatmul.msk.bf16.vlgmr.msra.gmra.mxu2 %vm31_vm1, %v15_v9  ;;  %111 = vmatpush.bf16.msrb.mxu0 %v44_v14  ;;  %v50_v16 = vsel %vm35_vm0, %v30_v15, 0  ;;  %v28_v17 = vld.sshfl [vmem:[#allocation1 + $0x28] sm:$0xff pattern:$0x73625140] }
  0x10   :  { %252 = vmatmul.msk.bf16.vlgmr.msra.gmra.mxu3 %vm31_vm1, %v15_v9  ;;  %137 = vmatpush.bf16.msrb.mxu2 %v48_v12  ;;  %v46_v18 = vsel %vm35_vm0, %v28_v17, 0 }
  0x11   :  { %150 = vmatpush.bf16.msrb.mxu3 %v50_v16  ;;  %124 = vmatpush.bf16.msrb.mxu1 %v46_v18  ;;  %v188_v18 = vld [vmem:[%s366_s3] sm:$0xf] }
  0x1e   :  { %253 = vmatmul.msk.bf16.vlgmr.msrb.gmra.mxu0 %vm31_vm1, %v15_v9  ;;  %254 = vmatmul.msk.bf16.vlgmr.msrb.gmra.mxu1 %vm31_vm1, %v15_v9 }
  0x1f   :  { %255 = vmatmul.msk.bf16.vlgmr.msrb.gmra.mxu2 %vm31_vm1, %v15_v9 }
  0x20   :  { %256 = vmatmul.msk.bf16.vlgmr.msrb.gmra.mxu3 %vm31_vm1, %v15_v9 }
  0x8b   :  { %v61_v19 = vpop.f32.mrf.mxu0  ;;  %v74_v20 = vpop.f32.mrf.mxu1 }
  0x8c   :  { %v164_v21 = vrot.slane %v74_v20, 4  ;;  %v189_v25 = vsel %vm168_vm2, %v61_v19, 0.0  ;;  %v190_v26 = vsel %vm168_vm2, %v74_v20, 0.0  ;;  %v210_v31 = vmul.f32 %v61_v19, %v61_v19 }
  0x8d   :  { %v211_v32 = vmul.f32 %v74_v20, %v74_v20  ;;  %v191_v34 = vadd.f32 %v190_v26, %v189_v25 }
  0x8e   :  { %v169_v22 = vsel %vm168_vm2, %v61_v19, %v164_v21  ;;  %v218_v38 = vsel %vm168_vm2, %v210_v31, 0.0  ;;  %v209_v21 = vld [vmem:[%s367_s4] sm:$0xf] }
  0x8f   :  { %177 = vst [vmem:[%s365_s2] sm:$0xff] %v169_v22  ;;  %v219_v39 = vsel %vm168_vm2, %v211_v32, 0.0 }
  0x90   :  { %v220_v46 = vadd.f32 %v219_v39, %v218_v38 }
  0x92   :  { %v87_v24 = vpop.f32.mrf.mxu2 }
  0x93   :  { %v100_v27 = vpop.f32.mrf.mxu3  ;;  %v63_v28 = vpop.f32.mrf.mxu0  ;;  %v192_v33 = vsel %vm168_vm2, %v87_v24, 0.0  ;;  %v212_v36 = vmul.f32 %v87_v24, %v87_v24 }
  0x94   :  { %v165_v29 = vrot.slane %v100_v27, 4  ;;  %v76_v30 = vpop.f32.mrf.mxu1  ;;  %v193_v37 = vadd.f32 %v192_v33, %v191_v34  ;;  %v194_v40 = vsel %vm168_vm2, %v100_v27, 0.0  ;;  %v213_v43 = vmul.f32 %v100_v27, %v100_v27 }
  0x95   :  { %v221_v42 = vsel %vm168_vm2, %v212_v36, 0.0 }
  0x96   :  { %v170_v35 = vsel %vm168_vm2, %v87_v24, %v165_v29  ;;  %v195_v47 = vadd.f32 %v194_v40, %v193_v37  ;;  %v222_v52 = vadd.f32 %v221_v42, %v220_v46  ;;  %v223_v54 = vsel %vm168_vm2, %v213_v43, 0.0 }
  0x97   :  { %178 = vst [vmem:[%s365_s2 + $0x8] sm:$0xff] %v170_v35 }
  0x98   :  { %v224_v59 = vadd.f32 %v223_v54, %v222_v52 }
  0x9a   :  { %v89_v41 = vpop.f32.mrf.mxu2 }
  0x9b   :  { %v102_v44 = vpop.f32.mrf.mxu3  ;;  %v113_v45 = vpop.f32.mrf.mxu0 }
  0x9c   :  { %v196_v48 = vsel %vm168_vm2, %v113_v45, 0.0  ;;  %v126_v49 = vpop.f32.mrf.mxu1  ;;  %v214_v50 = vmul.f32 %v113_v45, %v113_v45 }
  0x9d   :  { %v166_v51 = vrot.slane %v126_v49, 4  ;;  %v197_v53 = vadd.f32 %v196_v48, %v195_v47  ;;  %v198_v56 = vsel %vm168_vm2, %v126_v49, 0.0  ;;  %v215_v58 = vmul.f32 %v126_v49, %v126_v49 }
  0x9e   :  { %v225_v57 = vsel %vm168_vm2, %v214_v50, 0.0 }
  0x9f   :  { %v171_v55 = vsel %vm168_vm2, %v113_v45, %v166_v51  ;;  %v199_v61 = vadd.f32 %v198_v56, %v197_v53  ;;  %v226_v2 = vadd.f32 %v225_v57, %v224_v59  ;;  %v227_v7 = vsel %vm168_vm2, %v215_v58, 0.0 }
  0xa0   :  { %179 = vst [vmem:[%s365_s2 + $0x10] sm:$0xff] %v171_v55 }
  0xa1   :  { %v228_v12 = vadd.f32 %v227_v7, %v226_v2 }
  0xa2   :  { %v139_v60 = vpop.f32.mrf.mxu2 }
  0xa3   :  { %v216_v62 = vmul.f32 %v139_v60, %v139_v60  ;;  %v152_v63 = vpop.f32.mrf.mxu3  ;;  %v115_v0 = vpop.f32.mrf.mxu0  ;;  %v200_v1 = vsel %vm168_vm2, %v139_v60, 0.0 }
  0xa4   :  { %v167_v3 = vrot.slane %v152_v63, 4  ;;  %v128_v4 = vpop.f32.mrf.mxu1  ;;  %v201_v5 = vadd.f32 %v200_v1, %v199_v61  ;;  %v202_v6 = vsel %vm168_vm2, %v152_v63, 0.0  ;;  %v217_v10 = vmul.f32 %v152_v63, %v152_v63 }
  0xa5   :  { %v229_v11 = vsel %vm168_vm2, %v216_v62, 0.0 }
  0xa6   :  { %v172_v8 = vsel %vm168_vm2, %v139_v60, %v167_v3  ;;  %v203_v9 = vadd.f32 %v202_v6, %v201_v5  ;;  %v230_v14 = vadd.f32 %v229_v11, %v228_v12  ;;  %v231_v16 = vsel %vm168_vm2, %v217_v10, 0.0 }
  0xa7   :  { %180 = vst [vmem:[%s365_s2 + $0x18] sm:$0xff] %v172_v8 }
  0xa8   :  { %204 = vadd.xlane.f32.xlu0 %v203_v9  ;;  %v232_v17 = vadd.f32 %v231_v16, %v230_v14 }
  0xaa   :  { %v141_v13 = vpop.f32.mrf.mxu2 }
  0xab   :  { %v154_v15 = vpop.f32.mrf.mxu3 }
  0xb0   :  { %233 = vadd.xlane.f32.xlu0 %v232_v17 }
 0x11b   :  { %v205_v19 = vpop.xlane.xlu0 %204 }
 0x11c   :  { %v206_v20 = vadd.f32 %v205_v19, %v188_v18 }
 0x11e   :  { %208 = vst.msk [vmem:[%s366_s3] sm:$0xf] %vm185_vm3, %v206_v20 }
 0x123   :  { %v234_v22 = vpop.xlane.xlu0 %233 }
 0x124   :  { %v235_v23 = vadd.f32 %v234_v22, %v209_v21 }
 0x126   :  { %236 = vst.msk [vmem:[%s367_s4] sm:$0xf] %vm185_vm3, %v235_v23 }

// kernel: forward.20
= control target key start
LH: loop header
LB: loop body
LE: loop exit
PB: predicated region body
PF: predicated region fallthrough
CT: control target
= control target key end

     0   :  { %v117_v0 = vmov 0   ;;  %s211_s1 = inlined_call_operand.vmem [shape: f32[8,1], index: 1, kind: input, shape index: {}]   ;;  %s212_s2 = inlined_call_operand.vmem [shape: f32[8,1], index: 2, kind: input, shape index: {}]   ;;  %s213_s3 = inlined_call_operand.vmem [shape: f32[8,1], index: 3, kind: input, shape index: {}]   ;;  %s214_s4 = inlined_call_operand.vmem [shape: f32[8,1], index: 4, kind: input, shape index: {}]   ;;  %s215_s0 = inlined_call_operand.vmem [shape: f32[8,1024], index: 0, kind: input, shape index: {}]   ;;  %s216_s5 = inlined_call_operand.vmem [shape: f32[8,1024], index: 5, kind: output, shape index: {}]  }
   0x1   :  { %114 = vset.pattern.permute.xlu0 %v117_v0  ;;  %v20_v1 = vld [vmem:[%s211_s1] sm:$0xff]  ;;  %v44_v23 = vld [vmem:[%s215_s0 + $0x8] sm:$0xff]  ;;  %v45_v24 = vld [vmem:[%s215_s0 + $0x10] sm:$0xff] }
   0x2   :  { %v22_v2 = vld [vmem:[%s212_s2] sm:$0xff]  ;;  %v21_v3 = vmul.f32 0.0009765625, %v20_v1  ;;  %v46_v25 = vld [vmem:[%s215_s0 + $0x18] sm:$0xff]  ;;  %v48_v27 = vld [vmem:[%s215_s0 + $0x28] sm:$0xff] }
   0x3   :  { %v23_v4 = vmul.f32 0.0009765625, %v22_v2  ;;  %v27_v14 = vld [vmem:[%s213_s3] sm:$0xff]  ;;  %v49_v28 = vld [vmem:[%s215_s0 + $0x30] sm:$0xff]  ;;  %v50_v29 = vld [vmem:[%s215_s0 + $0x38] sm:$0xff] }
   0x4   :  { %v24_v5 = vmul.f32 %v21_v3, %v21_v3  ;;  %v40_v19 = vld [vmem:[%s214_s4] sm:$0xff] }
   0x5   :  { %v43_v22 = vld [vmem:[%s215_s0] sm:$0xff] }
   0x6   :  { %v25_v6 = vsub.f32 %v23_v4, %v24_v5  ;;  %v47_v26 = vld [vmem:[%s215_s0 + $0x20] sm:$0xff] }
   0x8   :  { %v26_v7 = vmax.f32 %v25_v6, 0.0 }
   0xa   :  { %v28_v8 = vadd.f32 1e-05, %v26_v7 }
   0xc   :  { %115 = vrsqrt.f32 %v28_v8  ;;  %vm35_vm0 = vweird.f32 %v28_v8 }
  0x12   :  { %v116_v9 = vpop.eup %115 }
  0x13   :  { %v30_v10 = vmul.f32 %v116_v9, %v28_v8  ;;  %vm36_vm1 = vweird.f32 %v116_v9 }
  0x14   :  { %vm37_vm2 = vmor %vm35_vm0, %vm36_vm1 }
  0x15   :  { %v31_v11 = vmul.f32 %v116_v9, %v30_v10 }
  0x17   :  { %v32_v12 = vmul.f32 0.5, %v31_v11 }
  0x19   :  { %v33_v13 = vsub.f32 1.5, %v32_v12 }
  0x1b   :  { %v34_v15 = vmul.f32 %v116_v9, %v33_v13 }
  0x1d   :  { %v38_v16 = vsel %vm37_vm2, %v116_v9, %v34_v15 }
  0x1e   :  { %v39_v17 = vmul.f32 %v38_v16, %v27_v14 }
  0x20   :  { %53 = vperm.xlu0 %114, %v39_v17   ;;  %v41_v18 = vmul.f32 %v39_v17, %v21_v3 }
  0x22   :  { %v42_v20 = vsub.f32 %v40_v19, %v41_v18 }
  0x28   :  { %66 = vperm.xlu0 %114, %v42_v20  }
  0x92   :  { %v54_v21 = vpop.permute.xlu0 %53 }
  0x93   :  { %v56_v30 = vmul.f32 %v54_v21, %v43_v22  ;;  %v57_v31 = vmul.f32 %v54_v21, %v44_v23  ;;  %v58_v32 = vmul.f32 %v54_v21, %v45_v24  ;;  %v59_v33 = vmul.f32 %v54_v21, %v46_v25 }
  0x94   :  { %v60_v35 = vmul.f32 %v54_v21, %v47_v26  ;;  %v61_v36 = vmul.f32 %v54_v21, %v48_v27  ;;  %v62_v37 = vmul.f32 %v54_v21, %v49_v28  ;;  %v63_v38 = vmul.f32 %v54_v21, %v50_v29 }
  0x9a   :  { %v67_v34 = vpop.permute.xlu0 %66 }
  0x9b   :  { %v69_v39 = vadd.f32 %v67_v34, %v56_v30  ;;  %v70_v40 = vadd.f32 %v67_v34, %v57_v31  ;;  %v71_v41 = vadd.f32 %v67_v34, %v58_v32  ;;  %v72_v42 = vadd.f32 %v67_v34, %v59_v33 }
  0x9c   :  { %v73_v43 = vadd.f32 %v67_v34, %v60_v35  ;;  %v74_v44 = vadd.f32 %v67_v34, %v61_v36  ;;  %v75_v45 = vadd.f32 %v67_v34, %v62_v37  ;;  %v76_v46 = vadd.f32 %v67_v34, %v63_v38 }
  0x9d   :  { %vm77_vm3 = vcmp.ge.f32.partialorder %v69_v39, 0.0  ;;  %vm78_vm4 = vcmp.ge.f32.partialorder %v70_v40, 0.0  ;;  %vm79_vm5 = vcmp.ge.f32.partialorder %v71_v41, 0.0  ;;  %vm80_vm6 = vcmp.ge.f32.partialorder %v72_v42, 0.0 }
  0x9e   :  { %vm81_vm7 = vcmp.ge.f32.partialorder %v73_v43, 0.0  ;;  %v85_v47 = vmul.f32 0.01, %v69_v39  ;;  %v86_v48 = vmul.f32 0.01, %v70_v40  ;;  %vm82_vm8 = vcmp.ge.f32.partialorder %v74_v44, 0.0 }
  0x9f   :  { %v87_v49 = vmul.f32 0.01, %v71_v41  ;;  %v88_v50 = vmul.f32 0.01, %v72_v42  ;;  %v89_v51 = vmul.f32 0.01, %v73_v43 }
  0xa0   :  { %v90_v52 = vmul.f32 0.01, %v74_v44  ;;  %v91_v53 = vmul.f32 0.01, %v75_v45  ;;  %v93_v54 = vsel %vm77_vm3, %v69_v39, %v85_v47  ;;  %v94_v55 = vsel %vm78_vm4, %v70_v40, %v86_v48 }
  0xa1   :  { %vm83_vm9 = vcmp.ge.f32.partialorder %v75_v45, 0.0  ;;  %v92_v56 = vmul.f32 0.01, %v76_v46  ;;  %v95_v57 = vsel %vm79_vm5, %v71_v41, %v87_v49  ;;  %v96_v58 = vsel %vm80_vm6, %v72_v42, %v88_v50  ;;  %101 = vst [vmem:[%s216_s5] sm:$0xff] %v93_v54 }
  0xa2   :  { %vm84_vm10 = vcmp.ge.f32.partialorder %v76_v46, 0.0  ;;  %v97_v59 = vsel %vm81_vm7, %v73_v43, %v89_v51  ;;  %102 = vst [vmem:[%s216_s5 + $0x8] sm:$0xff] %v94_v55  ;;  %v98_v60 = vsel %vm82_vm8, %v74_v44, %v90_v52  ;;  %v99_v61 = vsel %vm83_vm9, %v75_v45, %v91_v53 }
  0xa3   :  { %103 = vst [vmem:[%s216_s5 + $0x10] sm:$0xff] %v95_v57  ;;  %v100_v62 = vsel %vm84_vm10, %v76_v46, %v92_v56 }
  0xa4   :  { %104 = vst [vmem:[%s216_s5 + $0x18] sm:$0xff] %v96_v58 }
  0xa5   :  { %105 = vst [vmem:[%s216_s5 + $0x20] sm:$0xff] %v97_v59 }
  0xa6   :  { %106 = vst [vmem:[%s216_s5 + $0x28] sm:$0xff] %v98_v60 }
  0xa7   :  { %107 = vst [vmem:[%s216_s5 + $0x30] sm:$0xff] %v99_v61 }
  0xa8   :  { %108 = vst [vmem:[%s216_s5 + $0x38] sm:$0xff] %v100_v62 }

// kernel: forward.19
= control target key start
LH: loop header
LB: loop body
LE: loop exit
PB: predicated region body
PF: predicated region fallthrough
CT: control target
= control target key end

     0   :  { %vm348_vm0 = vcmask 1045504   ;;  %vm344_vm1 = vcmask 883712   ;;  %vm489_vm2 = vcmask 7168   ;;  %s1263_s1 = inlined_call_operand.vmem [shape: bf16[108,1024], index: 1, kind: input, shape index: {}]   ;;  %s1264_s0 = inlined_call_operand.vmem [shape: bf16[8,108], index: 0, kind: input, shape index: {}]   ;;  %s1265_s2 = inlined_call_operand.vmem [shape: f32[8,1024], index: 2, kind: output, shape index: {0}]   ;;  %s1266_s3 = inlined_call_operand.vmem [shape: f32[8,1], index: 3, kind: output, shape index: {1}]   ;;  %s1267_s4 = inlined_call_operand.vmem [shape: f32[8,1], index: 4, kind: output, shape index: {2}]  }
   0x1   :  { %v731_v0 = vld [vmem:[%s1263_s1 + $0x180] sm:$0xf]  ;;  %v817_v2 = vld [vmem:[%s1263_s1 + $0x184] sm:$0xf]  ;;  %v739_v5 = vld [vmem:[%s1263_s1 + $0x188] sm:$0xf] }
   0x2   :  { %v821_v1 = vld [vmem:[%s1263_s1 + $0x19c] sm:$0x30]  ;;  %v733_v4 = vld [vmem:[%s1263_s1 + $0x1a0] sm:$0x30]  ;;  %v822_v6 = vld [vmem:[%s1263_s1 + $0x1a4] sm:$0x30] }
   0x3   :  { %v732_v3 = vor.u32 %v821_v1, %v731_v0  ;;  %v736_v7 = vor.u32 %v817_v2, %v733_v4  ;;  %v740_v8 = vor.u32 %v822_v6, %v739_v5  ;;  %v818_v9 = vld [vmem:[%s1263_s1 + $0x18c] sm:$0xf]  ;;  %v699_v11 = vld [vmem:[%s1263_s1 + $0x140] sm:$0xf]  ;;  %v809_v15 = vld [vmem:[%s1263_s1 + $0x144] sm:$0xf] }
   0x4   :  { %v741_v10 = vld [vmem:[%s1263_s1 + $0x1a8] sm:$0x30]  ;;  %v813_v14 = vld [vmem:[%s1263_s1 + $0x15c] sm:$0xf0]  ;;  %v701_v19 = vld [vmem:[%s1263_s1 + $0x160] sm:$0xf0] }
   0x5   :  { %v350_v12 = vsel %vm348_vm0, %v732_v3, 0  ;;  %v744_v13 = vor.u32 %v818_v9, %v741_v10  ;;  %v353_v16 = vsel %vm348_vm0, %v736_v7, 0  ;;  %v356_v17 = vsel %vm348_vm0, %v740_v8, 0  ;;  %v707_v20 = vld [vmem:[%s1263_s1 + $0x148] sm:$0xf] }
   0x6   :  { %374 = vmatpush.bf16.msra.mxu0 %v350_v12  ;;  %v700_v18 = vor.u32 %v813_v14, %v699_v11  ;;  %387 = vmatpush.bf16.msra.mxu1 %v353_v16  ;;  %v704_v22 = vor.u32 %v809_v15, %v701_v19  ;;  %v814_v23 = vld [vmem:[%s1263_s1 + $0x164] sm:$0xf0]  ;;  %v810_v24 = vld [vmem:[%s1263_s1 + $0x14c] sm:$0xf]  ;;  %v667_v27 = vld [vmem:[%s1263_s1 + $0x100] sm:$0xf] }
   0x7   :  { %400 = vmatpush.bf16.msra.mxu2 %v356_v17  ;;  %v359_v21 = vsel %vm348_vm0, %v744_v13, 0  ;;  %v708_v25 = vor.u32 %v814_v23, %v707_v20  ;;  %v709_v26 = vld [vmem:[%s1263_s1 + $0x168] sm:$0xf0]  ;;  %v805_v28 = vld [vmem:[%s1263_s1 + $0x11c] sm:$0xf0] }
   0x8   :  { %413 = vmatpush.bf16.msra.mxu3 %v359_v21  ;;  %v712_v29 = vor.u32 %v810_v24, %v709_v26  ;;  %v801_v30 = vld [vmem:[%s1263_s1 + $0x104] sm:$0xf]  ;;  %v675_v32 = vld [vmem:[%s1263_s1 + $0x108] sm:$0xf]  ;;  %v668_v33 = vor.u32 %v805_v28, %v667_v27  ;;  %v802_v35 = vld [vmem:[%s1263_s1 + $0x10c] sm:$0xf] }
   0x9   :  { %v669_v31 = vld [vmem:[%s1263_s1 + $0x120] sm:$0xf0]  ;;  %v806_v34 = vld [vmem:[%s1263_s1 + $0x124] sm:$0xf0]  ;;  %v677_v36 = vld [vmem:[%s1263_s1 + $0x128] sm:$0xf0] }
   0xa   :  { %375 = vmatpush.bf16.msra.mxu0 %v700_v18  ;;  %388 = vmatpush.bf16.msra.mxu1 %v704_v22  ;;  %v672_v37 = vor.u32 %v801_v30, %v669_v31  ;;  %v676_v38 = vor.u32 %v806_v34, %v675_v32  ;;  %v635_v39 = vld [vmem:[%s1263_s1 + $0xc0] sm:$0xf]  ;;  %v793_v41 = vld [vmem:[%s1263_s1 + $0xc4] sm:$0xf]  ;;  %v680_v42 = vor.u32 %v802_v35, %v677_v36  ;;  %v643_v44 = vld [vmem:[%s1263_s1 + $0xc8] sm:$0xf] }
   0xb   :  { %401 = vmatpush.bf16.msra.mxu2 %v708_v25  ;;  %v797_v40 = vld [vmem:[%s1263_s1 + $0xdc] sm:$0xf0]  ;;  %v637_v43 = vld [vmem:[%s1263_s1 + $0xe0] sm:$0xf0]  ;;  %v798_v45 = vld [vmem:[%s1263_s1 + $0xe4] sm:$0xf0] }
   0xc   :  { %414 = vmatpush.bf16.msra.mxu3 %v712_v29  ;;  %v794_v46 = vld [vmem:[%s1263_s1 + $0xcc] sm:$0xf]  ;;  %v636_v48 = vor.u32 %v797_v40, %v635_v39  ;;  %v640_v49 = vor.u32 %v793_v41, %v637_v43  ;;  %v644_v50 = vor.u32 %v798_v45, %v643_v44  ;;  %v603_v51 = vld [vmem:[%s1263_s1 + $0x80] sm:$0xf]  ;;  %v785_v53 = vld [vmem:[%s1263_s1 + $0x84] sm:$0xf] }
   0xd   :  { %v645_v47 = vld [vmem:[%s1263_s1 + $0xe8] sm:$0xf0]  ;;  %v789_v52 = vld [vmem:[%s1263_s1 + $0x9c] sm:$0xf0]  ;;  %v605_v55 = vld [vmem:[%s1263_s1 + $0xa0] sm:$0xf0] }
   0xe   :  { %376 = vmatpush.bf16.msra.mxu0 %v668_v33  ;;  %389 = vmatpush.bf16.msra.mxu1 %v672_v37  ;;  %v648_v54 = vor.u32 %v794_v46, %v645_v47  ;;  %v611_v56 = vld [vmem:[%s1263_s1 + $0x88] sm:$0xf]  ;;  %v786_v58 = vld [vmem:[%s1263_s1 + $0x8c] sm:$0xf]  ;;  %v604_v60 = vor.u32 %v789_v52, %v603_v51  ;;  %v571_v61 = vld [vmem:[%s1263_s1 + $0x40] sm:$0xf]  ;;  %v608_v63 = vor.u32 %v785_v53, %v605_v55 }
   0xf   :  { %402 = vmatpush.bf16.msra.mxu2 %v676_v38  ;;  %v790_v57 = vld [vmem:[%s1263_s1 + $0xa4] sm:$0xf0]  ;;  %v613_v59 = vld [vmem:[%s1263_s1 + $0xa8] sm:$0xf0]  ;;  %v781_v62 = vld [vmem:[%s1263_s1 + $0x5c] sm:$0xf0] }
  0x10   :  { %415 = vmatpush.bf16.msra.mxu3 %v680_v42  ;;  %v612_v0 = vor.u32 %v790_v57, %v611_v56  ;;  %v777_v1 = vld [vmem:[%s1263_s1 + $0x44] sm:$0xf]  ;;  %v579_v3 = vld [vmem:[%s1263_s1 + $0x48] sm:$0xf]  ;;  %v616_v4 = vor.u32 %v786_v58, %v613_v59  ;;  %v778_v6 = vld [vmem:[%s1263_s1 + $0x4c] sm:$0xf]  ;;  %v572_v11 = vor.u32 %v781_v62, %v571_v61 }
  0x11   :  { %v573_v2 = vld [vmem:[%s1263_s1 + $0x60] sm:$0xf0]  ;;  %v782_v5 = vld [vmem:[%s1263_s1 + $0x64] sm:$0xf0]  ;;  %v581_v7 = vld [vmem:[%s1263_s1 + $0x68] sm:$0xf0] }
  0x12   :  { %377 = vmatpush.bf16.msra.mxu0 %v636_v48  ;;  %390 = vmatpush.bf16.msra.mxu1 %v640_v49  ;;  %v539_v8 = vld [vmem:[%s1263_s1] sm:$0xf]  ;;  %v747_v10 = vld [vmem:[%s1263_s1 + $0x190] sm:$0xf]  ;;  %v769_v12 = vld [vmem:[%s1263_s1 + $0x4] sm:$0xf]  ;;  %v576_v17 = vor.u32 %v777_v1, %v573_v2  ;;  %v580_v18 = vor.u32 %v782_v5, %v579_v3  ;;  %v584_v22 = vor.u32 %v778_v6, %v581_v7 }
  0x13   :  { %403 = vmatpush.bf16.msra.mxu2 %v644_v50  ;;  %v773_v9 = vld [vmem:[%s1263_s1 + $0x1c] sm:$0xf0]  ;;  %v541_v13 = vld [vmem:[%s1263_s1 + $0x20] sm:$0xf0]  ;;  %v823_v14 = vld [vmem:[%s1263_s1 + $0x1ac] sm:$0x30] }
  0x14   :  { %416 = vmatpush.bf16.msra.mxu3 %v648_v54  ;;  %v819_v15 = vld [vmem:[%s1263_s1 + $0x194] sm:$0xf]  ;;  %v547_v19 = vld [vmem:[%s1263_s1 + $0x8] sm:$0xf]  ;;  %v755_v20 = vld [vmem:[%s1263_s1 + $0x198] sm:$0xf]  ;;  %v748_v24 = vor.u32 %v823_v14, %v747_v10  ;;  %v540_v31 = vor.u32 %v773_v9, %v539_v8  ;;  %v544_v32 = vor.u32 %v769_v12, %v541_v13 }
  0x15   :  { %v749_v16 = vld [vmem:[%s1263_s1 + $0x1b0] sm:$0x30]  ;;  %v824_v21 = vld [vmem:[%s1263_s1 + $0x1b4] sm:$0x30]  ;;  %v774_v23 = vld [vmem:[%s1263_s1 + $0x24] sm:$0xf0] }
  0x16   :  { %378 = vmatpush.bf16.msra.mxu0 %v604_v60  ;;  %391 = vmatpush.bf16.msra.mxu1 %v608_v63  ;;  %v820_v25 = vld [vmem:[%s1263_s1 + $0x19c] sm:$0xf]  ;;  %v770_v27 = vld [vmem:[%s1263_s1 + $0xc] sm:$0xf]  ;;  %v752_v29 = vor.u32 %v819_v15, %v749_v16  ;;  %v756_v30 = vor.u32 %v824_v21, %v755_v20  ;;  %v548_v33 = vor.u32 %v774_v23, %v547_v19  ;;  %v362_v36 = vsel %vm348_vm0, %v748_v24, 0 }
  0x17   :  { %404 = vmatpush.bf16.msra.mxu2 %v612_v0  ;;  %v757_v26 = vld [vmem:[%s1263_s1 + $0x1b8] sm:$0x30]  ;;  %v549_v28 = vld [vmem:[%s1263_s1 + $0x28] sm:$0xf0]  ;;  %v715_v37 = vld [vmem:[%s1263_s1 + $0x150] sm:$0xf] }
  0x18   :  { %417 = vmatpush.bf16.msra.mxu3 %v616_v4  ;;  %v760_v34 = vor.u32 %v820_v25, %v757_v26  ;;  %v552_v35 = vor.u32 %v770_v27, %v549_v28  ;;  %v365_v38 = vsel %vm348_vm0, %v752_v29, 0  ;;  %v368_v39 = vsel %vm348_vm0, %v756_v30, 0  ;;  %v1057_v40 = vld [vmem:[%s1264_s0] sm:$0xf]  ;;  %v815_v41 = vld [vmem:[%s1263_s1 + $0x16c] sm:$0xf0] }
  0x19   :  { %v811_v42 = vld [vmem:[%s1263_s1 + $0x154] sm:$0xf]  ;;  %v723_v44 = vld [vmem:[%s1263_s1 + $0x158] sm:$0xf]  ;;  %v812_v47 = vld [vmem:[%s1263_s1 + $0x15c] sm:$0xf]  ;;  %v716_v49 = vor.u32 %v815_v41, %v715_v37 }
  0x1a   :  { %379 = vmatpush.bf16.msra.mxu0 %v572_v11  ;;  %392 = vmatpush.bf16.msra.mxu1 %v576_v17  ;;  %v717_v43 = vld [vmem:[%s1263_s1 + $0x170] sm:$0xf0]  ;;  %v816_v45 = vld [vmem:[%s1263_s1 + $0x174] sm:$0xf0]  ;;  %v371_v46 = vsel %vm348_vm0, %v760_v34, 0 }
  0x1b   :  { %405 = vmatpush.bf16.msra.mxu2 %v580_v18  ;;  %v725_v48 = vld [vmem:[%s1263_s1 + $0x178] sm:$0xf0]  ;;  %v720_v50 = vor.u32 %v811_v42, %v717_v43  ;;  %v724_v51 = vor.u32 %v816_v45, %v723_v44  ;;  %v683_v52 = vld [vmem:[%s1263_s1 + $0x110] sm:$0xf]  ;;  %v803_v54 = vld [vmem:[%s1263_s1 + $0x114] sm:$0xf] }
  0x1c   :  { %418 = vmatpush.bf16.msra.mxu3 %v584_v22  ;;  %v807_v53 = vld [vmem:[%s1263_s1 + $0x12c] sm:$0xf0]  ;;  %v728_v55 = vor.u32 %v812_v47, %v725_v48  ;;  %v685_v56 = vld [vmem:[%s1263_s1 + $0x130] sm:$0xf0]  ;;  %v691_v57 = vld [vmem:[%s1263_s1 + $0x118] sm:$0xf] }
  0x1d   :  { %v808_v58 = vld [vmem:[%s1263_s1 + $0x134] sm:$0xf0]  ;;  %v804_v59 = vld [vmem:[%s1263_s1 + $0x11c] sm:$0xf]  ;;  %v684_v61 = vor.u32 %v807_v53, %v683_v52  ;;  %v688_v62 = vor.u32 %v803_v54, %v685_v56  ;;  %v651_v0 = vld [vmem:[%s1263_s1 + $0xd0] sm:$0xf] }
  0x1e   :  { %380 = vmatpush.bf16.msra.mxu0 %v540_v31  ;;  %393 = vmatpush.bf16.msra.mxu1 %v544_v32  ;;  %v693_v60 = vld [vmem:[%s1263_s1 + $0x138] sm:$0xf0]  ;;  %v692_v63 = vor.u32 %v808_v58, %v691_v57  ;;  %v799_v1 = vld [vmem:[%s1263_s1 + $0xec] sm:$0xf0]  ;;  %v795_v2 = vld [vmem:[%s1263_s1 + $0xd4] sm:$0xf] }
  0x1f   :  { %406 = vmatpush.bf16.msra.mxu2 %v548_v33  ;;  %v696_v3 = vor.u32 %v804_v59, %v693_v60  ;;  %v653_v4 = vld [vmem:[%s1263_s1 + $0xf0] sm:$0xf0]  ;;  %v659_v5 = vld [vmem:[%s1263_s1 + $0xd8] sm:$0xf]  ;;  %v796_v7 = vld [vmem:[%s1263_s1 + $0xdc] sm:$0xf]  ;;  %v652_v9 = vor.u32 %v799_v1, %v651_v0 }
  0x20   :  { %419 = vmatpush.bf16.msra.mxu3 %v552_v35  ;;  %v800_v6 = vld [vmem:[%s1263_s1 + $0xf4] sm:$0xf0]  ;;  %v661_v8 = vld [vmem:[%s1263_s1 + $0xf8] sm:$0xf0]  ;;  %v656_v10 = vor.u32 %v795_v2, %v653_v4  ;;  %v619_v12 = vld [vmem:[%s1263_s1 + $0x90] sm:$0xf] }
  0x21   :  { %761 = vmatmul.msk.bf16.vlgmr.msra.gmra.mxu0 %vm344_vm1, %v1057_v40  ;;  %762 = vmatmul.msk.bf16.vlgmr.msra.gmra.mxu1 %vm344_vm1, %v1057_v40  ;;  %v660_v11 = vor.u32 %v800_v6, %v659_v5  ;;  %v791_v13 = vld [vmem:[%s1263_s1 + $0xac] sm:$0xf0]  ;;  %v787_v14 = vld [vmem:[%s1263_s1 + $0x94] sm:$0xf]  ;;  %v664_v15 = vor.u32 %v796_v7, %v661_v8  ;;  %v627_v17 = vld [vmem:[%s1263_s1 + $0x98] sm:$0xf] }
  0x22   :  { %426 = vmatpush.bf16.msrb.mxu0 %v362_v36  ;;  %439 = vmatpush.bf16.msrb.mxu1 %v365_v38  ;;  %v621_v16 = vld [vmem:[%s1263_s1 + $0xb0] sm:$0xf0]  ;;  %v792_v18 = vld [vmem:[%s1263_s1 + $0xb4] sm:$0xf0]  ;;  %v788_v19 = vld [vmem:[%s1263_s1 + $0x9c] sm:$0xf]  ;;  %v620_v21 = vor.u32 %v791_v13, %v619_v12 }
  0x23   :  { %452 = vmatpush.bf16.msrb.mxu2 %v368_v39  ;;  %764 = vmatmul.msk.bf16.vlgmr.msra.gmra.mxu3 %vm344_vm1, %v1057_v40  ;;  %v629_v20 = vld [vmem:[%s1263_s1 + $0xb8] sm:$0xf0]  ;;  %v624_v22 = vor.u32 %v787_v14, %v621_v16  ;;  %v628_v23 = vor.u32 %v792_v18, %v627_v17  ;;  %v587_v24 = vld [vmem:[%s1263_s1 + $0x50] sm:$0xf]  ;;  %v779_v26 = vld [vmem:[%s1263_s1 + $0x54] sm:$0xf] }
  0x24   :  { %465 = vmatpush.bf16.msrb.mxu3 %v371_v46  ;;  %763 = vmatmul.msk.bf16.vlgmr.msra.gmra.mxu2 %vm344_vm1, %v1057_v40  ;;  %v783_v25 = vld [vmem:[%s1263_s1 + $0x6c] sm:$0xf0]  ;;  %v632_v27 = vor.u32 %v788_v19, %v629_v20  ;;  %v589_v28 = vld [vmem:[%s1263_s1 + $0x70] sm:$0xf0]  ;;  %v595_v29 = vld [vmem:[%s1263_s1 + $0x58] sm:$0xf] }
  0x25   :  { %v784_v30 = vld [vmem:[%s1263_s1 + $0x74] sm:$0xf0]  ;;  %v780_v31 = vld [vmem:[%s1263_s1 + $0x5c] sm:$0xf]  ;;  %v588_v33 = vor.u32 %v783_v25, %v587_v24  ;;  %v592_v34 = vor.u32 %v779_v26, %v589_v28  ;;  %v555_v36 = vld [vmem:[%s1263_s1 + $0x10] sm:$0xf] }
  0x26   :  { %427 = vmatpush.bf16.msrb.mxu0 %v716_v49  ;;  %440 = vmatpush.bf16.msrb.mxu1 %v720_v50  ;;  %v597_v32 = vld [vmem:[%s1263_s1 + $0x78] sm:$0xf0]  ;;  %v596_v35 = vor.u32 %v784_v30, %v595_v29  ;;  %v775_v37 = vld [vmem:[%s1263_s1 + $0x2c] sm:$0xf0]  ;;  %v771_v38 = vld [vmem:[%s1263_s1 + $0x14] sm:$0xf] }
  0x27   :  { %453 = vmatpush.bf16.msrb.mxu2 %v724_v51  ;;  %v600_v39 = vor.u32 %v780_v31, %v597_v32  ;;  %v557_v41 = vld [vmem:[%s1263_s1 + $0x30] sm:$0xf0]  ;;  %v563_v42 = vld [vmem:[%s1263_s1 + $0x18] sm:$0xf]  ;;  %v772_v44 = vld [vmem:[%s1263_s1 + $0x1c] sm:$0xf]  ;;  %v556_v46 = vor.u32 %v775_v37, %v555_v36 }
  0x28   :  { %466 = vmatpush.bf16.msrb.mxu3 %v728_v55  ;;  %v776_v43 = vld [vmem:[%s1263_s1 + $0x34] sm:$0xf0]  ;;  %v565_v45 = vld [vmem:[%s1263_s1 + $0x38] sm:$0xf0]  ;;  %v560_v47 = vor.u32 %v771_v38, %v557_v41  ;;  %v826_v56 = vmov 0.0  }
  0x29   :  { %v564_v48 = vor.u32 %v776_v43, %v563_v42  ;;  %v568_v49 = vor.u32 %v772_v44, %v565_v45  ;;  %490 = vst.msk [vmem:[%s1266_s3] sm:$0xff] %vm489_vm2, %v826_v56 }
  0x2a   :  { %428 = vmatpush.bf16.msrb.mxu0 %v684_v61  ;;  %441 = vmatpush.bf16.msrb.mxu1 %v688_v62  ;;  %491 = vst.msk [vmem:[%s1267_s4] sm:$0xff] %vm489_vm2, %v826_v56 }
  0x2b   :  { %454 = vmatpush.bf16.msrb.mxu2 %v692_v63 }
  0x2c   :  { %467 = vmatpush.bf16.msrb.mxu3 %v696_v3 }
  0x2e   :  { %429 = vmatpush.bf16.msrb.mxu0 %v652_v9  ;;  %442 = vmatpush.bf16.msrb.mxu1 %v656_v10 }
  0x2f   :  { %455 = vmatpush.bf16.msrb.mxu2 %v660_v11 }
  0x30   :  { %468 = vmatpush.bf16.msrb.mxu3 %v664_v15  ;;  %v492_v24 = vld [vmem:[%s1266_s3] sm:$0xff] }
  0x32   :  { %430 = vmatpush.bf16.msrb.mxu0 %v620_v21  ;;  %443 = vmatpush.bf16.msrb.mxu1 %v624_v22 }
  0x33   :  { %456 = vmatpush.bf16.msrb.mxu2 %v628_v23 }
  0x34   :  { %469 = vmatpush.bf16.msrb.mxu3 %v632_v27  ;;  %v505_v27 = vld [vmem:[%s1267_s4] sm:$0xff] }
  0x36   :  { %431 = vmatpush.bf16.msrb.mxu0 %v588_v33  ;;  %444 = vmatpush.bf16.msrb.mxu1 %v592_v34 }
  0x37   :  { %457 = vmatpush.bf16.msrb.mxu2 %v596_v35 }
  0x38   :  { %470 = vmatpush.bf16.msrb.mxu3 %v600_v39 }
  0x3a   :  { %432 = vmatpush.bf16.msrb.mxu0 %v556_v46  ;;  %445 = vmatpush.bf16.msrb.mxu1 %v560_v47 }
  0x3b   :  { %458 = vmatpush.bf16.msrb.mxu2 %v564_v48 }
  0x3c   :  { %471 = vmatpush.bf16.msrb.mxu3 %v568_v49 }
  0x3d   :  { %765 = vmatmul.msk.bf16.vlgmr.msrb.gmra.mxu0 %vm344_vm1, %v1057_v40  ;;  %766 = vmatmul.msk.bf16.vlgmr.msrb.gmra.mxu1 %vm344_vm1, %v1057_v40 }
  0x3e   :  { %767 = vmatmul.msk.bf16.vlgmr.msrb.gmra.mxu2 %vm344_vm1, %v1057_v40 }
  0x3f   :  { %768 = vmatmul.msk.bf16.vlgmr.msrb.gmra.mxu3 %vm344_vm1, %v1057_v40 }
  0x9e   :  { %v382_v50 = vpop.f32.mrf.mxu0  ;;  %v395_v51 = vpop.f32.mrf.mxu1 }
  0x9f   :  { %477 = vst [vmem:[%s1265_s2] sm:$0xff] %v382_v50  ;;  %v493_v58 = vadd.f32 %v395_v51, %v382_v50  ;;  %v506_v59 = vmul.f32 %v382_v50, %v382_v50  ;;  %v507_v60 = vmul.f32 %v395_v51, %v395_v51 }
  0xa0   :  { %478 = vst [vmem:[%s1265_s2 + $0x8] sm:$0xff] %v395_v51 }
  0xa1   :  { %v514_v62 = vadd.f32 %v507_v60, %v506_v59 }
  0xa6   :  { %v421_v53 = vpop.f32.mrf.mxu3  ;;  %v384_v40 = vpop.f32.mrf.mxu0 }
  0xa7   :  { %v408_v52 = vpop.f32.mrf.mxu2  ;;  %480 = vst [vmem:[%s1265_s2 + $0x18] sm:$0xff] %v421_v53  ;;  %v397_v54 = vpop.f32.mrf.mxu1  ;;  %v509_v4 = vmul.f32 %v421_v53, %v421_v53 }
  0xa8   :  { %479 = vst [vmem:[%s1265_s2 + $0x10] sm:$0xff] %v408_v52  ;;  %v494_v61 = vadd.f32 %v493_v58, %v408_v52  ;;  %v508_v63 = vmul.f32 %v408_v52, %v408_v52 }
  0xaa   :  { %v495_v0 = vadd.f32 %v494_v61, %v421_v53  ;;  %v515_v3 = vadd.f32 %v514_v62, %v508_v63 }
  0xac   :  { %v516_v7 = vadd.f32 %v515_v3, %v509_v4 }
  0xae   :  { %v423_v57 = vpop.f32.mrf.mxu3 }
  0xaf   :  { %v410_v55 = vpop.f32.mrf.mxu2 }
  0xba   :  { %v434_v1 = vpop.f32.mrf.mxu0  ;;  %v447_v2 = vpop.f32.mrf.mxu1 }
  0xbb   :  { %481 = vst [vmem:[%s1265_s2 + $0x20] sm:$0xff] %v434_v1  ;;  %v496_v5 = vadd.f32 %v495_v0, %v434_v1  ;;  %v510_v6 = vmul.f32 %v434_v1, %v434_v1  ;;  %v511_v11 = vmul.f32 %v447_v2, %v447_v2 }
  0xbc   :  { %482 = vst [vmem:[%s1265_s2 + $0x28] sm:$0xff] %v447_v2 }
  0xbd   :  { %v497_v8 = vadd.f32 %v496_v5, %v447_v2  ;;  %v517_v10 = vadd.f32 %v516_v7, %v510_v6 }
  0xbf   :  { %v518_v18 = vadd.f32 %v517_v10, %v511_v11 }
  0xc1   :  { %v460_v9 = vpop.f32.mrf.mxu2 }
  0xc2   :  { %483 = vst [vmem:[%s1265_s2 + $0x30] sm:$0xff] %v460_v9  ;;  %v473_v12 = vpop.f32.mrf.mxu3  ;;  %v436_v13 = vpop.f32.mrf.mxu0  ;;  %v498_v14 = vadd.f32 %v497_v8, %v460_v9  ;;  %v512_v16 = vmul.f32 %v460_v9, %v460_v9 }
  0xc3   :  { %484 = vst [vmem:[%s1265_s2 + $0x38] sm:$0xff] %v473_v12  ;;  %v449_v15 = vpop.f32.mrf.mxu1  ;;  %v513_v19 = vmul.f32 %v473_v12, %v473_v12 }
  0xc4   :  { %v499_v17 = vadd.f32 %v498_v14, %v473_v12  ;;  %v519_v20 = vadd.f32 %v518_v18, %v512_v16 }
  0xc6   :  { %500 = vadd.xlane.f32.xlu0 %v499_v17  ;;  %v520_v23 = vadd.f32 %v519_v20, %v513_v19 }
  0xc9   :  { %v462_v21 = vpop.f32.mrf.mxu2 }
  0xca   :  { %v475_v22 = vpop.f32.mrf.mxu3 }
  0xce   :  { %521 = vadd.xlane.f32.xlu0 %v520_v23 }
 0x139   :  { %v501_v25 = vpop.xlane.xlu0 %500 }
 0x13a   :  { %v502_v26 = vadd.f32 %v501_v25, %v492_v24 }
 0x13c   :  { %504 = vst.msk [vmem:[%s1266_s3] sm:$0xff] %vm489_vm2, %v502_v26 }
 0x141   :  { %v522_v28 = vpop.xlane.xlu0 %521 }
 0x142   :  { %v523_v29 = vadd.f32 %v522_v28, %v505_v27 }
 0x144   :  { %524 = vst.msk [vmem:[%s1267_s4] sm:$0xff] %vm489_vm2, %v523_v29 }

// kernel: forward.23
= control target key start
LH: loop header
LB: loop body
LE: loop exit
PB: predicated region body
PF: predicated region fallthrough
CT: control target
= control target key end

     0   :  { %vm140_vm0 = vcmask 1041408   ;;  %vm136_vm1 = vcmask 293888   ;;  %vm281_vm2 = vcmask 1043456   ;;  %vm298_vm3 = vcmask 3072   ;;  %s658_s1 = inlined_call_operand.vmem [shape: bf16[36,1024], index: 1, kind: input, shape index: {}]   ;;  %s659_s0 = inlined_call_operand.vmem [shape: bf16[4,36], index: 0, kind: input, shape index: {}]   ;;  %s660_s2 = inlined_call_operand.vmem [shape: f32[4,1024], index: 2, kind: output, shape index: {0}]   ;;  %s661_s3 = inlined_call_operand.vmem [shape: f32[4,1], index: 3, kind: output, shape index: {1}]   ;;  %s662_s4 = inlined_call_operand.vmem [shape: f32[4,1], index: 4, kind: output, shape index: {2}]  }
   0x1   :  { %v32_v0 = vld [vmem:[%s658_s1 + $0x80] sm:$0x33]  ;;  %v33_v1 = vld [vmem:[%s658_s1 + $0x88] sm:$0x33]  ;;  %v35_v31 = vld [vmem:[%s658_s1 + $0x98] sm:$0x33] }
   0x2   :  { %v88_v2 = vunpack.c.l.b16 %v32_v0  ;;  %v89_v3 = vunpack.c.h.b16 %v32_v0  ;;  %v90_v4 = vunpack.c.l.b16 %v33_v1  ;;  %v91_v5 = vunpack.c.h.b16 %v33_v1  ;;  %v396_v6 = vld [vmem:[%s658_s1 + $0x40] sm:$0xf]  ;;  %v442_v12 = vld [vmem:[%s658_s1 + $0x44] sm:$0xf]  ;;  %v404_v14 = vld [vmem:[%s658_s1 + $0x48] sm:$0xf] }
   0x3   :  { %v446_v7 = vld [vmem:[%s658_s1 + $0x5c] sm:$0xf0]  ;;  %v398_v13 = vld [vmem:[%s658_s1 + $0x60] sm:$0xf0]  ;;  %v447_v15 = vld [vmem:[%s658_s1 + $0x64] sm:$0xf0]  ;;  %v94_v36 = vunpack.c.l.b16 %v35_v31  ;;  %v95_v38 = vunpack.c.h.b16 %v35_v31 }
   0x4   :  { %v112_v8 = vpack.c.b16 %v88_v2, %v88_v2  ;;  %v113_v9 = vpack.c.b16 %v89_v3, %v89_v3  ;;  %v114_v10 = vpack.c.b16 %v90_v4, %v90_v4  ;;  %v115_v11 = vpack.c.b16 %v91_v5, %v91_v5  ;;  %v443_v16 = vld [vmem:[%s658_s1 + $0x4c] sm:$0xf]  ;;  %v364_v22 = vld [vmem:[%s658_s1] sm:$0xf]  ;;  %v434_v26 = vld [vmem:[%s658_s1 + $0x4] sm:$0xf] }
   0x5   :  { %v406_v17 = vld [vmem:[%s658_s1 + $0x68] sm:$0xf0]  ;;  %v397_v23 = vor.u32 %v446_v7, %v396_v6  ;;  %v401_v24 = vor.u32 %v442_v12, %v398_v13  ;;  %v438_v25 = vld [vmem:[%s658_s1 + $0x1c] sm:$0xf0]  ;;  %v366_v27 = vld [vmem:[%s658_s1 + $0x20] sm:$0xf0]  ;;  %v405_v28 = vor.u32 %v447_v15, %v404_v14  ;;  %v118_v42 = vpack.c.b16 %v94_v36, %v94_v36 }
   0x6   :  { %v142_v18 = vsel %vm140_vm0, %v112_v8, 0  ;;  %v145_v19 = vsel %vm140_vm0, %v113_v9, 0  ;;  %v148_v20 = vsel %vm140_vm0, %v114_v10, 0  ;;  %v151_v21 = vsel %vm140_vm0, %v115_v11, 0  ;;  %v372_v30 = vld [vmem:[%s658_s1 + $0x8] sm:$0xf] }
   0x7   :  { %170 = vmatpush.bf16.msra.mxu0 %v142_v18  ;;  %183 = vmatpush.bf16.msra.mxu1 %v145_v19  ;;  %v409_v29 = vor.u32 %v443_v16, %v406_v17  ;;  %v34_v32 = vld [vmem:[%s658_s1 + $0x90] sm:$0x33]  ;;  %v439_v33 = vld [vmem:[%s658_s1 + $0x24] sm:$0xf0]  ;;  %v435_v34 = vld [vmem:[%s658_s1 + $0xc] sm:$0xf]  ;;  %v365_v40 = vor.u32 %v438_v25, %v364_v22  ;;  %v369_v41 = vor.u32 %v434_v26, %v366_v27 }
   0x8   :  { %196 = vmatpush.bf16.msra.mxu2 %v148_v20  ;;  %209 = vmatpush.bf16.msra.mxu3 %v151_v21  ;;  %v374_v35 = vld [vmem:[%s658_s1 + $0x28] sm:$0xf0]  ;;  %v92_v37 = vunpack.c.l.b16 %v34_v32  ;;  %v93_v39 = vunpack.c.h.b16 %v34_v32  ;;  %v373_v44 = vor.u32 %v439_v33, %v372_v30  ;;  %v119_v46 = vpack.c.b16 %v95_v38, %v95_v38  ;;  %v420_v48 = vld [vmem:[%s658_s1 + $0x58] sm:$0xf]  ;;  %v412_v52 = vld [vmem:[%s658_s1 + $0x50] sm:$0xf] }
   0x9   :  { %v377_v45 = vor.u32 %v435_v34, %v374_v35  ;;  %v449_v49 = vld [vmem:[%s658_s1 + $0x74] sm:$0xf0]  ;;  %v160_v50 = vsel %vm140_vm0, %v118_v42, 0  ;;  %v448_v53 = vld [vmem:[%s658_s1 + $0x6c] sm:$0xf0]  ;;  %v451_v17 = vmov 0.0  }
   0xa   :  { %v116_v43 = vpack.c.b16 %v92_v37, %v92_v37  ;;  %v117_v47 = vpack.c.b16 %v93_v39, %v93_v39  ;;  %v15_v54 = vld [vmem:[%s659_s0] sm:$0x3]  ;;  %v445_v55 = vld [vmem:[%s658_s1 + $0x5c] sm:$0xf]  ;;  %v444_v57 = vld [vmem:[%s658_s1 + $0x54] sm:$0xf]  ;;  %v421_v60 = vor.u32 %v449_v49, %v420_v48  ;;  %v413_v61 = vor.u32 %v448_v53, %v412_v52 }
   0xb   :  { %171 = vmatpush.bf16.msra.mxu0 %v397_v23  ;;  %184 = vmatpush.bf16.msra.mxu1 %v401_v24  ;;  %v422_v56 = vld [vmem:[%s658_s1 + $0x78] sm:$0xf0]  ;;  %v163_v58 = vsel %vm140_vm0, %v119_v46, 0  ;;  %v414_v62 = vld [vmem:[%s658_s1 + $0x70] sm:$0xf0] }
   0xc   :  { %197 = vmatpush.bf16.msra.mxu2 %v405_v28  ;;  %210 = vmatpush.bf16.msra.mxu3 %v409_v29  ;;  %v154_v51 = vsel %vm140_vm0, %v116_v43, 0  ;;  %v157_v59 = vsel %vm140_vm0, %v117_v47, 0  ;;  %v388_v63 = vld [vmem:[%s658_s1 + $0x18] sm:$0xf]  ;;  %v380_v1 = vld [vmem:[%s658_s1 + $0x10] sm:$0xf]  ;;  %v425_v3 = vor.u32 %v445_v55, %v422_v56  ;;  %v417_v4 = vor.u32 %v444_v57, %v414_v62 }
   0xd   :  { %v441_v0 = vld [vmem:[%s658_s1 + $0x34] sm:$0xf0]  ;;  %v440_v2 = vld [vmem:[%s658_s1 + $0x2c] sm:$0xf0]  ;;  %v436_v5 = vld [vmem:[%s658_s1 + $0x14] sm:$0xf] }
   0xe   :  { %v389_v6 = vor.u32 %v441_v0, %v388_v63  ;;  %v381_v7 = vor.u32 %v440_v2, %v380_v1  ;;  %v382_v8 = vld [vmem:[%s658_s1 + $0x30] sm:$0xf0]  ;;  %v437_v9 = vld [vmem:[%s658_s1 + $0x1c] sm:$0xf]  ;;  %299 = vst.msk [vmem:[%s661_s3] sm:$0xf] %vm298_vm3, %v451_v17 }
   0xf   :  { %172 = vmatpush.bf16.msra.mxu0 %v365_v40  ;;  %185 = vmatpush.bf16.msra.mxu1 %v369_v41  ;;  %v390_v10 = vld [vmem:[%s658_s1 + $0x38] sm:$0xf0]  ;;  %v385_v11 = vor.u32 %v436_v5, %v382_v8  ;;  %300 = vst.msk [vmem:[%s662_s4] sm:$0xf] %vm298_vm3, %v451_v17 }
  0x10   :  { %198 = vmatpush.bf16.msra.mxu2 %v373_v44  ;;  %211 = vmatpush.bf16.msra.mxu3 %v377_v45  ;;  %v393_v12 = vor.u32 %v437_v9, %v390_v10 }
  0x12   :  { %426 = vmatmul.msk.bf16.vlgmr.msra.gmra.mxu0 %vm136_vm1, %v15_v54  ;;  %427 = vmatmul.msk.bf16.vlgmr.msra.gmra.mxu1 %vm136_vm1, %v15_v54 }
  0x13   :  { %222 = vmatpush.bf16.msrb.mxu0 %v154_v51  ;;  %428 = vmatmul.msk.bf16.vlgmr.msra.gmra.mxu2 %vm136_vm1, %v15_v54 }
  0x14   :  { %248 = vmatpush.bf16.msrb.mxu2 %v160_v50  ;;  %429 = vmatmul.msk.bf16.vlgmr.msra.gmra.mxu3 %vm136_vm1, %v15_v54 }
  0x15   :  { %261 = vmatpush.bf16.msrb.mxu3 %v163_v58  ;;  %235 = vmatpush.bf16.msrb.mxu1 %v157_v59 }
  0x17   :  { %223 = vmatpush.bf16.msrb.mxu0 %v413_v61 }
  0x18   :  { %249 = vmatpush.bf16.msrb.mxu2 %v421_v60 }
  0x19   :  { %262 = vmatpush.bf16.msrb.mxu3 %v425_v3  ;;  %236 = vmatpush.bf16.msrb.mxu1 %v417_v4 }
  0x1b   :  { %224 = vmatpush.bf16.msrb.mxu0 %v381_v7 }
  0x1c   :  { %250 = vmatpush.bf16.msrb.mxu2 %v389_v6 }
  0x1d   :  { %237 = vmatpush.bf16.msrb.mxu1 %v385_v11  ;;  %263 = vmatpush.bf16.msrb.mxu3 %v393_v12  ;;  %v301_v12 = vld [vmem:[%s661_s3] sm:$0xf] }
  0x22   :  { %430 = vmatmul.msk.bf16.vlgmr.msrb.gmra.mxu0 %vm136_vm1, %v15_v54  ;;  %431 = vmatmul.msk.bf16.vlgmr.msrb.gmra.mxu1 %vm136_vm1, %v15_v54 }
  0x23   :  { %432 = vmatmul.msk.bf16.vlgmr.msrb.gmra.mxu2 %vm136_vm1, %v15_v54 }
  0x24   :  { %433 = vmatmul.msk.bf16.vlgmr.msrb.gmra.mxu3 %vm136_vm1, %v15_v54 }
  0x8f   :  { %v174_v13 = vpop.f32.mrf.mxu0  ;;  %v187_v14 = vpop.f32.mrf.mxu1 }
  0x90   :  { %v277_v15 = vrot.slane %v187_v14, 4  ;;  %v302_v20 = vsel %vm281_vm2, %v174_v13, 0.0  ;;  %v303_v21 = vsel %vm281_vm2, %v187_v14, 0.0  ;;  %v323_v25 = vmul.f32 %v174_v13, %v174_v13 }
  0x91   :  { %v324_v26 = vmul.f32 %v187_v14, %v187_v14  ;;  %v304_v29 = vadd.f32 %v303_v21, %v302_v20 }
  0x92   :  { %v282_v16 = vsel %vm281_vm2, %v174_v13, %v277_v15  ;;  %v331_v32 = vsel %vm281_vm2, %v323_v25, 0.0  ;;  %v322_v15 = vld [vmem:[%s662_s4] sm:$0xf] }
  0x93   :  { %290 = vst [vmem:[%s660_s2] sm:$0xff] %v282_v16  ;;  %v332_v33 = vsel %vm281_vm2, %v324_v26, 0.0 }
  0x94   :  { %v333_v41 = vadd.f32 %v332_v33, %v331_v32 }
  0x96   :  { %v200_v18 = vpop.f32.mrf.mxu2 }
  0x97   :  { %v213_v19 = vpop.f32.mrf.mxu3  ;;  %v176_v23 = vpop.f32.mrf.mxu0  ;;  %v305_v27 = vsel %vm281_vm2, %v200_v18, 0.0  ;;  %v325_v30 = vmul.f32 %v200_v18, %v200_v18 }
  0x98   :  { %v278_v22 = vrot.slane %v213_v19, 4  ;;  %v189_v24 = vpop.f32.mrf.mxu1  ;;  %v306_v31 = vadd.f32 %v305_v27, %v304_v29  ;;  %v307_v34 = vsel %vm281_vm2, %v213_v19, 0.0  ;;  %v326_v38 = vmul.f32 %v213_v19, %v213_v19 }
  0x99   :  { %v334_v37 = vsel %vm281_vm2, %v325_v30, 0.0 }
  0x9a   :  { %v283_v28 = vsel %vm281_vm2, %v200_v18, %v278_v22  ;;  %v308_v42 = vadd.f32 %v307_v34, %v306_v31  ;;  %v335_v46 = vadd.f32 %v334_v37, %v333_v41  ;;  %v336_v49 = vsel %vm281_vm2, %v326_v38, 0.0 }
  0x9b   :  { %291 = vst [vmem:[%s660_s2 + $0x8] sm:$0xff] %v283_v28 }
  0x9c   :  { %v337_v53 = vadd.f32 %v336_v49, %v335_v46 }
  0x9e   :  { %v202_v35 = vpop.f32.mrf.mxu2 }
  0x9f   :  { %v215_v36 = vpop.f32.mrf.mxu3  ;;  %v226_v39 = vpop.f32.mrf.mxu0 }
  0xa0   :  { %v239_v40 = vpop.f32.mrf.mxu1  ;;  %v309_v43 = vsel %vm281_vm2, %v226_v39, 0.0  ;;  %v327_v45 = vmul.f32 %v226_v39, %v226_v39 }
  0xa1   :  { %v279_v44 = vrot.slane %v239_v40, 4  ;;  %v310_v47 = vadd.f32 %v309_v43, %v308_v42  ;;  %v311_v50 = vsel %vm281_vm2, %v239_v40, 0.0  ;;  %v328_v52 = vmul.f32 %v239_v40, %v239_v40 }
  0xa2   :  { %v338_v51 = vsel %vm281_vm2, %v327_v45, 0.0 }
  0xa3   :  { %v284_v48 = vsel %vm281_vm2, %v226_v39, %v279_v44  ;;  %v312_v56 = vadd.f32 %v311_v50, %v310_v47  ;;  %v339_v62 = vadd.f32 %v338_v51, %v337_v53  ;;  %v340_v1 = vsel %vm281_vm2, %v328_v52, 0.0 }
  0xa4   :  { %292 = vst [vmem:[%s660_s2 + $0x10] sm:$0xff] %v284_v48 }
  0xa5   :  { %v341_v6 = vadd.f32 %v340_v1, %v339_v62 }
  0xa6   :  { %v252_v54 = vpop.f32.mrf.mxu2 }
  0xa7   :  { %v265_v55 = vpop.f32.mrf.mxu3  ;;  %v329_v57 = vmul.f32 %v252_v54, %v252_v54  ;;  %v228_v59 = vpop.f32.mrf.mxu0  ;;  %v313_v61 = vsel %vm281_vm2, %v252_v54, 0.0 }
  0xa8   :  { %v280_v58 = vrot.slane %v265_v55, 4  ;;  %v241_v60 = vpop.f32.mrf.mxu1  ;;  %v314_v63 = vadd.f32 %v313_v61, %v312_v56  ;;  %v315_v0 = vsel %vm281_vm2, %v265_v55, 0.0  ;;  %v330_v4 = vmul.f32 %v265_v55, %v265_v55 }
  0xa9   :  { %v342_v5 = vsel %vm281_vm2, %v329_v57, 0.0 }
  0xaa   :  { %v285_v2 = vsel %vm281_vm2, %v252_v54, %v280_v58  ;;  %v316_v3 = vadd.f32 %v315_v0, %v314_v63  ;;  %v343_v9 = vadd.f32 %v342_v5, %v341_v6  ;;  %v344_v10 = vsel %vm281_vm2, %v330_v4, 0.0 }
  0xab   :  { %293 = vst [vmem:[%s660_s2 + $0x18] sm:$0xff] %v285_v2 }
  0xac   :  { %317 = vadd.xlane.f32.xlu0 %v316_v3  ;;  %v345_v11 = vadd.f32 %v344_v10, %v343_v9 }
  0xae   :  { %v254_v7 = vpop.f32.mrf.mxu2 }
  0xaf   :  { %v267_v8 = vpop.f32.mrf.mxu3 }
  0xb4   :  { %346 = vadd.xlane.f32.xlu0 %v345_v11 }
 0x11f   :  { %v318_v13 = vpop.xlane.xlu0 %317 }
 0x120   :  { %v319_v14 = vadd.f32 %v318_v13, %v301_v12 }
 0x122   :  { %321 = vst.msk [vmem:[%s661_s3] sm:$0xf] %vm298_vm3, %v319_v14 }
 0x127   :  { %v347_v16 = vpop.xlane.xlu0 %346 }
 0x128   :  { %v348_v17 = vadd.f32 %v347_v16, %v322_v15 }
 0x12a   :  { %349 = vst.msk [vmem:[%s662_s4] sm:$0xf] %vm298_vm3, %v348_v17 }

// kernel: forward.31
= control target key start
LH: loop header
LB: loop body
LE: loop exit
PB: predicated region body
PF: predicated region fallthrough
CT: control target
= control target key end

     0   :  { %s110_s0 = inlined_call_operand.vmem [shape: f32[8,512], index: 0, kind: input, shape index: {}]   ;;  %s111_s1 = inlined_call_operand.vmem [shape: f32[8,512], index: 1, kind: input, shape index: {}]   ;;  %s112_s2 = inlined_call_operand.vmem [shape: f32[8,512], index: 2, kind: input, shape index: {}]   ;;  %s113_s3 = inlined_call_operand.vmem [shape: f32[8,512], index: 3, kind: output, shape index: {}]  }
   0x1   :  { %v14_v0 = vld [vmem:[%s110_s0] sm:$0xff]  ;;  %v15_v4 = vld [vmem:[%s110_s0 + $0x8] sm:$0xff]  ;;  %v16_v8 = vld [vmem:[%s110_s0 + $0x10] sm:$0xff] }
   0x2   :  { %v18_v1 = vld [vmem:[%s111_s1] sm:$0xff]  ;;  %v19_v5 = vld [vmem:[%s111_s1 + $0x8] sm:$0xff]  ;;  %v20_v9 = vld [vmem:[%s111_s1 + $0x10] sm:$0xff] }
   0x3   :  { %v26_v2 = vld [vmem:[%s112_s2] sm:$0xff]  ;;  %v22_v3 = vmax.f32 %v14_v0, %v18_v1  ;;  %v27_v6 = vld [vmem:[%s112_s2 + $0x8] sm:$0xff]  ;;  %v23_v7 = vmax.f32 %v15_v4, %v19_v5  ;;  %v28_v10 = vld [vmem:[%s112_s2 + $0x10] sm:$0xff]  ;;  %v24_v12 = vmax.f32 %v16_v8, %v20_v9 }
   0x4   :  { %v17_v13 = vld [vmem:[%s110_s0 + $0x18] sm:$0xff] }
   0x5   :  { %v30_v11 = vmax.f32 %v22_v3, %v26_v2  ;;  %v21_v14 = vld [vmem:[%s111_s1 + $0x18] sm:$0xff]  ;;  %v31_v16 = vmax.f32 %v23_v7, %v27_v6  ;;  %v32_v18 = vmax.f32 %v24_v12, %v28_v10 }
   0x6   :  { %v29_v15 = vld [vmem:[%s112_s2 + $0x18] sm:$0xff]  ;;  %v25_v17 = vmax.f32 %v17_v13, %v21_v14 }
   0x7   :  { %34 = vst [vmem:[%s113_s3] sm:$0xff] %v30_v11 }
   0x8   :  { %35 = vst [vmem:[%s113_s3 + $0x8] sm:$0xff] %v31_v16  ;;  %v33_v19 = vmax.f32 %v25_v17, %v29_v15 }
   0x9   :  { %36 = vst [vmem:[%s113_s3 + $0x10] sm:$0xff] %v32_v18 }
   0xa   :  { %37 = vst [vmem:[%s113_s3 + $0x18] sm:$0xff] %v33_v19 }

</bundles_post_ra>
